<compile_context>
chip_gen: v7x
topology: tpu7x:2x2x1
jax: 0.10.0
libtpu: 0.0.40
codegen_flags: <defaults>
</compile_context>

<pallas_src>
import jax
import jax.numpy as jnp
from jax.experimental import pallas as pl
from jax.experimental.pallas import tpu as pltpu

# ---------------- problem sizes (small, consistent with the module) ---------
B = 2                        # batch (envs per step)
C, H, W = 4, 16, 16          # map channels / spatial (NCHW)
KH, KW = 3, 3                # conv kernel
OC = 8                       # conv out channels
OH, OW = H - KH + 1, W - KW + 1   # valid conv, stride 1
P = OH * OW                  # spatial positions (196)
P_PAD = 256                  # positions padded to a lane-aligned width
CKK = C * KH * KW            # im2col patch size (36)
S_DIM = 8                    # state feature dim
HID = 32                     # shared-net output dim == `input_size` of Value head
OUT_LANES = 128              # packed per-step output slab width (lane-dense)
MISC_ROWS = 32               # packed small-parameter slab rows


# ---------------------------- Pallas kernel ---------------------------------
def shared_critic_kernel(patches_ref, state_ref, h0_ref,
                         w_conv_ref, w_map_ref, w_state_ref, w_fc_ref,
                         w_ih_ref, w_hh_ref, misc_ref,
                         out_ref, h_scr):
  f32, bf16 = jnp.float32, jnp.bfloat16
  t = pl.program_id(0)

  # Load the recurrent state once at t==0; carried in VMEM scratch afterwards.
  @pl.when(t == 0)
  def _():
    h_scr[...] = h0_ref[...]

  # ---- packed small-parameter slab: one DMA, static slices -----------------
  misc = misc_ref[...]                              # (32, 128) f32
  b_map = misc[0:1, 0:HID]
  b_state = misc[1:2, 0:HID]
  b_fc = misc[2:3, 0:HID]
  b_rzn = misc[3:4, 0:3 * HID]                      # [b_ir+b_hr | b_iz+b_hz | b_in]
  b_hn = misc[4:5, 0:HID]
  w_val = misc[5:6, 0:HID]
  b_val = misc[6:7, 0:1]
  b_conv = misc[8:8 + OC * B, 0:1]                  # per-(oc,b) conv bias rows

  # ---- conv: ONE MXU matmul, block-diag weights -> (OC*B, P_PAD) lane-dense -
  conv = jnp.dot(w_conv_ref[...], patches_ref[0],
                 preferred_element_type=f32)        # (OC*B, P_PAD)
  conv = jnp.maximum(conv + b_conv, 0.0)

  # ---- map-feature MLP: contraction over (oc, p); oc-major rows give
  #      contiguous static sublane slices (cheap), 8 accumulated matmuls ------
  mp = jnp.zeros((B, HID), f32)
  for oc in range(OC):
    rows = conv[oc * B:(oc + 1) * B, :].astype(bf16)     # (B, P_PAD)
    mp = mp + jnp.dot(rows, w_map_ref[oc], preferred_element_type=f32)
  map_feat = jnp.maximum(mp + b_map, 0.0)                # (B, HID)

  # ---- state-feature MLP ----------------------------------------------------
  state_feat = jnp.maximum(
      jnp.dot(state_ref[0].astype(bf16), w_state_ref[...],
              preferred_element_type=f32) + b_state, 0.0)  # (B, HID)

  # ---- fused fc: single matmul on the (B, 2*HID) lane concat ----------------
  feat = jnp.concatenate([map_feat, state_feat], axis=-1).astype(bf16)
  x = jnp.maximum(
      jnp.dot(feat, w_fc_ref[...], preferred_element_type=f32) + b_fc, 0.0)

  # ---- GRUCell (PyTorch semantics): 2 fused matmuls, static lane-slice gates;
  #      elementwise / transcendental math kept f32 ---------------------------
  h = h_scr[...]                                          # (B, HID) f32
  gi = jnp.dot(x.astype(bf16), w_ih_ref[...], preferred_element_type=f32) + b_rzn
  gh = jnp.dot(h.astype(bf16), w_hh_ref[...], preferred_element_type=f32)
  r = jax.nn.sigmoid(gi[:, 0:HID] + gh[:, 0:HID])
  z = jax.nn.sigmoid(gi[:, HID:2 * HID] + gh[:, HID:2 * HID])
  n = jnp.tanh(gi[:, 2 * HID:3 * HID] + r * (gh[:, 2 * HID:3 * HID] + b_hn))
  h_new = (1.0 - z) * n + z * h
  h_scr[...] = h_new

  # ---- Value head: Linear(HID, 1) as VPU mul + lane reduce ------------------
  value = jnp.sum(h_new * w_val, axis=-1, keepdims=True) + b_val

  # ---- single lane-dense (B, 128) per-step output slab ----------------------
  pad = jnp.zeros((B, OUT_LANES - HID - 1), f32)
  out_ref[0] = jnp.concatenate([h_new, value, pad], axis=-1)


# ------------------------------ host-side glue ------------------------------
def im2col_stacked(maps):
  """maps: (T, B, C, H, W) f32 -> per-step stacked patches (T, B*CKK, P_PAD) bf16.

  Row index = b*CKK + (c*KH*KW + i*KW + j) matches the block-diag conv weight;
  lanes p >= P are zero (their conv activations are killed by zero w_map rows).
  """
  t_len = maps.shape[0]
  cols = [maps[..., i:i + OH, j:j + OW] for i in range(KH) for j in range(KW)]
  pt = jnp.stack(cols, axis=3)                       # (T, B, C, KH*KW, OH, OW)
  pt = pt.reshape(t_len, B * CKK, P)
  pt = jnp.pad(pt, ((0, 0), (0, 0), (0, P_PAD - P)))
  return pt.astype(jnp.bfloat16)


def pack_params(tp):
  """Convert PyTorch-layout parameters into the kernel's packed/fused layout."""
  f32, bf16 = jnp.float32, jnp.bfloat16

  # Conv2d weight (OC, C, KH, KW) -> (OC, CKK) -> block-diagonal (OC*B, B*CKK),
  # output row = oc*B + b.
  w_conv = tp["conv_w"].reshape(OC, CKK)
  w_conv_bd = jnp.einsum("ok,bc->obck", w_conv,
                         jnp.eye(B, dtype=f32)).reshape(OC * B, B * CKK)

  # Linear(OC*P, HID) weight (HID, OC*P), NCHW flatten order -> (OC, P_PAD, HID),
  # zero rows for padded positions p >= P.
  w_map = tp["map_w"].reshape(HID, OC, P).transpose(1, 2, 0)   # (OC, P, HID)
  w_map = jnp.pad(w_map, ((0, 0), (0, P_PAD - P), (0, 0)))

  # GRU biases: fold b_ir+b_hr and b_iz+b_hz; b_in / b_hn stay separate.
  b_ih, b_hh = tp["gru_b_ih"], tp["gru_b_hh"]
  misc = jnp.zeros((MISC_ROWS, OUT_LANES), f32)
  misc = misc.at[0, :HID].set(tp["map_b"])
  misc = misc.at[1, :HID].set(tp["state_b"])
  misc = misc.at[2, :HID].set(tp["fc_b"])
  misc = misc.at[3, 0:HID].set(b_ih[0:HID] + b_hh[0:HID])
  misc = misc.at[3, HID:2 * HID].set(b_ih[HID:2 * HID] + b_hh[HID:2 * HID])
  misc = misc.at[3, 2 * HID:3 * HID].set(b_ih[2 * HID:3 * HID])
  misc = misc.at[4, :HID].set(b_hh[2 * HID:3 * HID])
  misc = misc.at[5, :HID].set(tp["value_w"].reshape(HID))
  misc = misc.at[6, 0].set(tp["value_b"][0])
  misc = misc.at[8:8 + OC * B, 0].set(jnp.repeat(tp["conv_b"], B))

  return {
      "w_conv_bd": w_conv_bd.astype(bf16),
      "w_map": w_map.astype(bf16),
      "w_state": tp["state_w"].T.astype(bf16),          # (S_DIM, HID)
      "w_fc": tp["fc_w"].T.astype(bf16),                # (2*HID, HID), [map | state] rows
      "w_ih": tp["gru_w_ih"].T.astype(bf16),            # (HID, 3*HID), cols [r|z|n]
      "w_hh": tp["gru_w_hh"].T.astype(bf16),
      "misc": misc,
  }


def shared_critic_rollout(states, maps, hidden_state, kp):
  """states: (T,B,S_DIM), maps: (T,B,C,H,W), hidden_state: (B,HID).

  Returns (values (T,B,1), final hidden (B,HID)).  One pallas_call for all T steps.
  """
  t_len = states.shape[0]
  patches = im2col_stacked(maps)
  states = states.astype(jnp.float32)

  step3 = lambda t: (t, 0, 0)       # per-step blocks, pipelined
  const2 = lambda t: (0, 0)         # grid-invariant -> DMA'd once, VMEM-resident
  const3 = lambda t: (0, 0, 0)

  in_specs = [
      pl.BlockSpec((1, B * CKK, P_PAD), step3),          # patches (per-step)
      pl.BlockSpec((1, B, S_DIM), step3),                # state   (per-step)
      pl.BlockSpec((B, HID), const2),                    # initial hidden
      pl.BlockSpec((OC * B, B * CKK), const2),           # block-diag conv weight
      pl.BlockSpec((OC, P_PAD, HID), const3),            # map-MLP weight
      pl.BlockSpec((S_DIM, HID), const2),                # state-MLP weight
      pl.BlockSpec((2 * HID, HID), const2),              # fused fc weight
      pl.BlockSpec((HID, 3 * HID), const2),              # GRU w_ih (fused r|z|n)
      pl.BlockSpec((HID, 3 * HID), const2),              # GRU w_hh (fused r|z|n)
      pl.BlockSpec((MISC_ROWS, OUT_LANES), const2),      # packed biases / value head
  ]
  out_spec = pl.BlockSpec((1, B, OUT_LANES), step3)

  packed = pl.pallas_call(
      shared_critic_kernel,
      out_shape=jax.ShapeDtypeStruct((t_len, B, OUT_LANES), jnp.float32),
      grid=(t_len,),
      in_specs=in_specs,
      out_specs=out_spec,
      scratch_shapes=[pltpu.VMEM((B, HID), jnp.float32)],   # recurrent hidden carry
      compiler_params=pltpu.CompilerParams(
          # Time axis is a true recurrence -> "arbitrary" (sequential).
          dimension_semantics=("arbitrary",),
          # Real padded, double-buffered footprint ~1.3 MiB; 4 MiB is ample on
          # v5e/v6e/v7x (v7x has 64 MiB/core total).
          vmem_limit_bytes=4 * 1024 * 1024,
      ),
  )(patches, states, hidden_state,
    kp["w_conv_bd"], kp["w_map"], kp["w_state"], kp["w_fc"],
    kp["w_ih"], kp["w_hh"], kp["misc"])

  values = packed[:, :, HID:HID + 1]        # (T, B, 1)
  new_hidden = packed[-1, :, :HID]          # (B, HID)
  return values, new_hidden


def shared_critic_forward(state, map_nchw, hidden_state, kp):
  """Single-step forward, matching SharedCritic.forward(state, map, hidden_state)."""
  values, new_hidden = shared_critic_rollout(state[None], map_nchw[None],
                                             hidden_state, kp)
  return values[0], new_hidden


def init_torch_params(key):
  """Random parameters in PyTorch layout (demonstrates the host-side conversion)."""
  ks = jax.random.split(key, 16)
  s = 0.1
  f32 = jnp.float32

  def rn(k, shape):
    return s * jax.random.normal(k, shape, f32)

  # Value head: orthogonal init (1xHID orthogonal == unit-norm row), zero bias —
  # matches preproc_layer(input_size, 1, is_sn=False).
  v = jax.random.normal(ks[12], (1, HID), f32)
  v = v / jnp.linalg.norm(v)

  return {
      "conv_w": rn(ks[0], (OC, C, KH, KW)), "conv_b": rn(ks[1], (OC,)),
      "map_w": rn(ks[2], (HID, OC * P)), "map_b": rn(ks[3], (HID,)),
      "state_w": rn(ks[4], (HID, S_DIM)), "state_b": rn(ks[5], (HID,)),
      "fc_w": rn(ks[6], (HID, 2 * HID)), "fc_b": rn(ks[7], (HID,)),
      "gru_w_ih": rn(ks[8], (3 * HID, HID)), "gru_w_hh": rn(ks[9], (3 * HID, HID)),
      "gru_b_ih": rn(ks[10], (3 * HID,)), "gru_b_hh": rn(ks[11], (3 * HID,)),
      "value_w": v, "value_b": jnp.zeros((1,), f32),
  }


if __name__ == "__main__":
  key = jax.random.PRNGKey(0)
  k_s, k_m, k_h, k_p = jax.random.split(key, 4)

  T = 8
  states = jax.random.normal(k_s, (T, B, S_DIM), jnp.float32)
  maps = jax.random.normal(k_m, (T, B, C, H, W), jnp.float32)      # NCHW per step
  hidden0 = jax.random.normal(k_h, (B, HID), jnp.float32)
  kparams = pack_params(init_torch_params(k_p))

  # Fused T-step rollout (one pallas_call, weights VMEM-resident across steps).
  values, h_last = shared_critic_rollout(states, maps, hidden0, kparams)
  # Single-step forward (module semantics): value, new_hidden.
  v0, h1 = shared_critic_forward(states[0], maps[0], hidden0, kparams)
  jax.block_until_ready((values, h_last, v0, h1))

  assert values.shape == (T, B, 1) and h_last.shape == (B, HID)
  assert v0.shape == (B, 1) and h1.shape == (B, HID)
  assert bool(jnp.all(jnp.isfinite(values))) and bool(jnp.all(jnp.isfinite(h_last)))
  assert bool(jnp.allclose(v0, values[0], atol=1e-5, rtol=1e-5))
  print("KERNEL_OK")
</pallas_src>

<mosaic_0001>
module attributes {stable_mosaic.version = 11 : i64} {
  func.func @shared_critic_kernel(%arg0: i32, %arg1: memref<1x72x256xbf16, #tpu.memory_space<vmem>>, %arg2: memref<1x2x8xf32, #tpu.memory_space<vmem>>, %arg3: memref<2x32xf32, #tpu.memory_space<vmem>>, %arg4: memref<16x72xbf16, #tpu.memory_space<vmem>>, %arg5: memref<8x256x32xbf16, #tpu.memory_space<vmem>>, %arg6: memref<8x32xbf16, #tpu.memory_space<vmem>>, %arg7: memref<64x32xbf16, #tpu.memory_space<vmem>>, %arg8: memref<32x96xbf16, #tpu.memory_space<vmem>>, %arg9: memref<32x96xbf16, #tpu.memory_space<vmem>>, %arg10: memref<32x128xf32, #tpu.memory_space<vmem>>, %arg11: memref<1x2x128xf32, #tpu.memory_space<vmem>>, %arg12: memref<2x32xf32, #tpu.memory_space<vmem>>) attributes {dimension_semantics = [#tpu.dimension_semantics<arbitrary>], iteration_bounds = array<i64: 8>, scalar_prefetch = 0 : i64, scratch_operands = 1 : i64, tpu.core_type = #tpu.core_type<tc>, window_params = [{transform_indices = @transform_0, window_bounds = array<i64: 1, 72, 256>}, {transform_indices = @transform_1, window_bounds = array<i64: 1, 2, 8>}, {pipeline_mode = #tpu.pipeline_mode<synchronous>, transform_indices = @transform_2, window_bounds = array<i64: 2, 32>}, {pipeline_mode = #tpu.pipeline_mode<synchronous>, transform_indices = @transform_3, window_bounds = array<i64: 16, 72>}, {pipeline_mode = #tpu.pipeline_mode<synchronous>, transform_indices = @transform_4, window_bounds = array<i64: 8, 256, 32>}, {pipeline_mode = #tpu.pipeline_mode<synchronous>, transform_indices = @transform_5, window_bounds = array<i64: 8, 32>}, {pipeline_mode = #tpu.pipeline_mode<synchronous>, transform_indices = @transform_6, window_bounds = array<i64: 64, 32>}, {pipeline_mode = #tpu.pipeline_mode<synchronous>, transform_indices = @transform_7, window_bounds = array<i64: 32, 96>}, {pipeline_mode = #tpu.pipeline_mode<synchronous>, transform_indices = @transform_8, window_bounds = array<i64: 32, 96>}, {pipeline_mode = #tpu.pipeline_mode<synchronous>, transform_indices = @transform_9, window_bounds = array<i64: 32, 128>}, {transform_indices = @transform_10, window_bounds = array<i64: 1, 2, 128>}]} {
    %c0_i32 = arith.constant 0 : i32
    %0 = arith.cmpi eq, %arg0, %c0_i32 : i32
    %1 = arith.extui %0 : i1 to i32
    %c0_i32_0 = arith.constant 0 : i32
    %2 = arith.cmpi ne, %1, %c0_i32_0 : i32
    scf.if %2 {
      %c0_64 = arith.constant 0 : index
      %c0_65 = arith.constant 0 : index
      %139 = vector.load %arg3[%c0_64, %c0_65] : memref<2x32xf32, #tpu.memory_space<vmem>>, vector<2x32xf32>
      %c0_66 = arith.constant 0 : index
      %c0_67 = arith.constant 0 : index
      %140 = vector.load %arg12[%c0_66, %c0_67] : memref<2x32xf32, #tpu.memory_space<vmem>>, vector<2x32xf32>
      tpu.vector_store %arg12[%c0_66, %c0_67], %139 {strides = array<i32>} : memref<2x32xf32, #tpu.memory_space<vmem>>, vector<2x32xf32>,
    } else {
    }
    %c0 = arith.constant 0 : index
    %c0_1 = arith.constant 0 : index
    %3 = vector.load %arg10[%c0, %c0_1] : memref<32x128xf32, #tpu.memory_space<vmem>>, vector<32x128xf32>
    %4 = vector.extract_strided_slice %3 {offsets = [0, 0], sizes = [1, 32], strides = [1, 1]} : vector<32x128xf32> to vector<1x32xf32>
    %5 = vector.extract_strided_slice %3 {offsets = [1, 0], sizes = [1, 32], strides = [1, 1]} : vector<32x128xf32> to vector<1x32xf32>
    %6 = vector.extract_strided_slice %3 {offsets = [2, 0], sizes = [1, 32], strides = [1, 1]} : vector<32x128xf32> to vector<1x32xf32>
    %7 = vector.extract_strided_slice %3 {offsets = [3, 0], sizes = [1, 96], strides = [1, 1]} : vector<32x128xf32> to vector<1x96xf32>
    %8 = vector.extract_strided_slice %3 {offsets = [4, 0], sizes = [1, 32], strides = [1, 1]} : vector<32x128xf32> to vector<1x32xf32>
    %9 = vector.extract_strided_slice %3 {offsets = [5, 0], sizes = [1, 32], strides = [1, 1]} : vector<32x128xf32> to vector<1x32xf32>
    %10 = vector.extract_strided_slice %3 {offsets = [6, 0], sizes = [1, 1], strides = [1, 1]} : vector<32x128xf32> to vector<1x1xf32>
    %11 = vector.extract_strided_slice %3 {offsets = [8, 0], sizes = [16, 1], strides = [1, 1]} : vector<32x128xf32> to vector<16x1xf32>
    %c0_2 = arith.constant 0 : index
    %c0_3 = arith.constant 0 : index
    %12 = vector.load %arg4[%c0_2, %c0_3] : memref<16x72xbf16, #tpu.memory_space<vmem>>, vector<16x72xbf16>
    %c0_4 = arith.constant 0 : index
    %c0_5 = arith.constant 0 : index
    %c0_6 = arith.constant 0 : index
    %13 = vector.load %arg1[%c0_4, %c0_5, %c0_6] : memref<1x72x256xbf16, #tpu.memory_space<vmem>>, vector<1x72x256xbf16>
    %14 = vector.shape_cast %13 : vector<1x72x256xbf16> to vector<72x256xbf16>
    %cst = arith.constant dense<0.000000e+00> : vector<16x256xf32>
    %15 = tpu.matmul %12, %14, %cst {dimension_numbers = #tpu.dot_dimension_numbers<[1], [0], [0], [1], [0, 0, 1, 1], [], []>} : vector<16x72xbf16>, vector<72x256xbf16>, vector<16x256xf32> -> vector<16x256xf32>
    %16 = vector.broadcast %11 : vector<16x1xf32> to vector<16x256xf32>
    %17 = arith.addf %15, %16 : vector<16x256xf32>
    %cst_7 = arith.constant 0.000000e+00 : f32
    %18 = vector.broadcast %cst_7 : f32 to vector<16x256xf32>
    %19 = arith.maximumf %17, %18 : vector<16x256xf32>
    %cst_8 = arith.constant 0.000000e+00 : f32
    %20 = vector.broadcast %cst_8 : f32 to vector<2x32xf32>
    %21 = vector.extract_strided_slice %19 {offsets = [0, 0], sizes = [2, 256], strides = [1, 1]} : vector<16x256xf32> to vector<2x256xf32>
    %22 = arith.truncf %21 : vector<2x256xf32> to vector<2x256xbf16>
    %c0_9 = arith.constant 0 : index
    %c0_10 = arith.constant 0 : index
    %c0_11 = arith.constant 0 : index
    %23 = vector.load %arg5[%c0_9, %c0_10, %c0_11] : memref<8x256x32xbf16, #tpu.memory_space<vmem>>, vector<1x256x32xbf16>
    %24 = vector.shape_cast %23 : vector<1x256x32xbf16> to vector<256x32xbf16>
    %cst_12 = arith.constant dense<0.000000e+00> : vector<2x32xf32>
    %25 = tpu.matmul %22, %24, %cst_12 {dimension_numbers = #tpu.dot_dimension_numbers<[1], [0], [0], [1], [0, 0, 1, 1], [], []>} : vector<2x256xbf16>, vector<256x32xbf16>, vector<2x32xf32> -> vector<2x32xf32>
    %26 = arith.addf %20, %25 : vector<2x32xf32>
    %27 = vector.extract_strided_slice %19 {offsets = [2, 0], sizes = [2, 256], strides = [1, 1]} : vector<16x256xf32> to vector<2x256xf32>
    %28 = arith.truncf %27 : vector<2x256xf32> to vector<2x256xbf16>
    %c1 = arith.constant 1 : index
    %c0_13 = arith.constant 0 : index
    %c0_14 = arith.constant 0 : index
    %29 = vector.load %arg5[%c1, %c0_13, %c0_14] : memref<8x256x32xbf16, #tpu.memory_space<vmem>>, vector<1x256x32xbf16>
    %30 = vector.shape_cast %29 : vector<1x256x32xbf16> to vector<256x32xbf16>
    %cst_15 = arith.constant dense<0.000000e+00> : vector<2x32xf32>
    %31 = tpu.matmul %28, %30, %cst_15 {dimension_numbers = #tpu.dot_dimension_numbers<[1], [0], [0], [1], [0, 0, 1, 1], [], []>} : vector<2x256xbf16>, vector<256x32xbf16>, vector<2x32xf32> -> vector<2x32xf32>
    %32 = arith.addf %26, %31 : vector<2x32xf32>
    %33 = vector.extract_strided_slice %19 {offsets = [4, 0], sizes = [2, 256], strides = [1, 1]} : vector<16x256xf32> to vector<2x256xf32>
    %34 = arith.truncf %33 : vector<2x256xf32> to vector<2x256xbf16>
    %c2 = arith.constant 2 : index
    %c0_16 = arith.constant 0 : index
    %c0_17 = arith.constant 0 : index
    %35 = vector.load %arg5[%c2, %c0_16, %c0_17] : memref<8x256x32xbf16, #tpu.memory_space<vmem>>, vector<1x256x32xbf16>
    %36 = vector.shape_cast %35 : vector<1x256x32xbf16> to vector<256x32xbf16>
    %cst_18 = arith.constant dense<0.000000e+00> : vector<2x32xf32>
    %37 = tpu.matmul %34, %36, %cst_18 {dimension_numbers = #tpu.dot_dimension_numbers<[1], [0], [0], [1], [0, 0, 1, 1], [], []>} : vector<2x256xbf16>, vector<256x32xbf16>, vector<2x32xf32> -> vector<2x32xf32>
    %38 = arith.addf %32, %37 : vector<2x32xf32>
    %39 = vector.extract_strided_slice %19 {offsets = [6, 0], sizes = [2, 256], strides = [1, 1]} : vector<16x256xf32> to vector<2x256xf32>
    %40 = arith.truncf %39 : vector<2x256xf32> to vector<2x256xbf16>
    %c3 = arith.constant 3 : index
    %c0_19 = arith.constant 0 : index
    %c0_20 = arith.constant 0 : index
    %41 = vector.load %arg5[%c3, %c0_19, %c0_20] : memref<8x256x32xbf16, #tpu.memory_space<vmem>>, vector<1x256x32xbf16>
    %42 = vector.shape_cast %41 : vector<1x256x32xbf16> to vector<256x32xbf16>
    %cst_21 = arith.constant dense<0.000000e+00> : vector<2x32xf32>
    %43 = tpu.matmul %40, %42, %cst_21 {dimension_numbers = #tpu.dot_dimension_numbers<[1], [0], [0], [1], [0, 0, 1, 1], [], []>} : vector<2x256xbf16>, vector<256x32xbf16>, vector<2x32xf32> -> vector<2x32xf32>
    %44 = arith.addf %38, %43 : vector<2x32xf32>
    %45 = vector.extract_strided_slice %19 {offsets = [8, 0], sizes = [2, 256], strides = [1, 1]} : vector<16x256xf32> to vector<2x256xf32>
    %46 = arith.truncf %45 : vector<2x256xf32> to vector<2x256xbf16>
    %c4 = arith.constant 4 : index
    %c0_22 = arith.constant 0 : index
    %c0_23 = arith.constant 0 : index
    %47 = vector.load %arg5[%c4, %c0_22, %c0_23] : memref<8x256x32xbf16, #tpu.memory_space<vmem>>, vector<1x256x32xbf16>
    %48 = vector.shape_cast %47 : vector<1x256x32xbf16> to vector<256x32xbf16>
    %cst_24 = arith.constant dense<0.000000e+00> : vector<2x32xf32>
    %49 = tpu.matmul %46, %48, %cst_24 {dimension_numbers = #tpu.dot_dimension_numbers<[1], [0], [0], [1], [0, 0, 1, 1], [], []>} : vector<2x256xbf16>, vector<256x32xbf16>, vector<2x32xf32> -> vector<2x32xf32>
    %50 = arith.addf %44, %49 : vector<2x32xf32>
    %51 = vector.extract_strided_slice %19 {offsets = [10, 0], sizes = [2, 256], strides = [1, 1]} : vector<16x256xf32> to vector<2x256xf32>
    %52 = arith.truncf %51 : vector<2x256xf32> to vector<2x256xbf16>
    %c5 = arith.constant 5 : index
    %c0_25 = arith.constant 0 : index
    %c0_26 = arith.constant 0 : index
    %53 = vector.load %arg5[%c5, %c0_25, %c0_26] : memref<8x256x32xbf16, #tpu.memory_space<vmem>>, vector<1x256x32xbf16>
    %54 = vector.shape_cast %53 : vector<1x256x32xbf16> to vector<256x32xbf16>
    %cst_27 = arith.constant dense<0.000000e+00> : vector<2x32xf32>
    %55 = tpu.matmul %52, %54, %cst_27 {dimension_numbers = #tpu.dot_dimension_numbers<[1], [0], [0], [1], [0, 0, 1, 1], [], []>} : vector<2x256xbf16>, vector<256x32xbf16>, vector<2x32xf32> -> vector<2x32xf32>
    %56 = arith.addf %50, %55 : vector<2x32xf32>
    %57 = vector.extract_strided_slice %19 {offsets = [12, 0], sizes = [2, 256], strides = [1, 1]} : vector<16x256xf32> to vector<2x256xf32>
    %58 = arith.truncf %57 : vector<2x256xf32> to vector<2x256xbf16>
    %c6 = arith.constant 6 : index
    %c0_28 = arith.constant 0 : index
    %c0_29 = arith.constant 0 : index
    %59 = vector.load %arg5[%c6, %c0_28, %c0_29] : memref<8x256x32xbf16, #tpu.memory_space<vmem>>, vector<1x256x32xbf16>
    %60 = vector.shape_cast %59 : vector<1x256x32xbf16> to vector<256x32xbf16>
    %cst_30 = arith.constant dense<0.000000e+00> : vector<2x32xf32>
    %61 = tpu.matmul %58, %60, %cst_30 {dimension_numbers = #tpu.dot_dimension_numbers<[1], [0], [0], [1], [0, 0, 1, 1], [], []>} : vector<2x256xbf16>, vector<256x32xbf16>, vector<2x32xf32> -> vector<2x32xf32>
    %62 = arith.addf %56, %61 : vector<2x32xf32>
    %63 = vector.extract_strided_slice %19 {offsets = [14, 0], sizes = [2, 256], strides = [1, 1]} : vector<16x256xf32> to vector<2x256xf32>
    %64 = arith.truncf %63 : vector<2x256xf32> to vector<2x256xbf16>
    %c7 = arith.constant 7 : index
    %c0_31 = arith.constant 0 : index
    %c0_32 = arith.constant 0 : index
    %65 = vector.load %arg5[%c7, %c0_31, %c0_32] : memref<8x256x32xbf16, #tpu.memory_space<vmem>>, vector<1x256x32xbf16>
    %66 = vector.shape_cast %65 : vector<1x256x32xbf16> to vector<256x32xbf16>
    %cst_33 = arith.constant dense<0.000000e+00> : vector<2x32xf32>
    %67 = tpu.matmul %64, %66, %cst_33 {dimension_numbers = #tpu.dot_dimension_numbers<[1], [0], [0], [1], [0, 0, 1, 1], [], []>} : vector<2x256xbf16>, vector<256x32xbf16>, vector<2x32xf32> -> vector<2x32xf32>
    %68 = arith.addf %62, %67 : vector<2x32xf32>
    %69 = vector.broadcast %4 : vector<1x32xf32> to vector<2x32xf32>
    %70 = arith.addf %68, %69 : vector<2x32xf32>
    %cst_34 = arith.constant 0.000000e+00 : f32
    %71 = vector.broadcast %cst_34 : f32 to vector<2x32xf32>
    %72 = arith.maximumf %70, %71 : vector<2x32xf32>
    %c0_35 = arith.constant 0 : index
    %c0_36 = arith.constant 0 : index
    %c0_37 = arith.constant 0 : index
    %73 = vector.load %arg2[%c0_35, %c0_36, %c0_37] : memref<1x2x8xf32, #tpu.memory_space<vmem>>, vector<1x2x8xf32>
    %74 = vector.shape_cast %73 : vector<1x2x8xf32> to vector<2x8xf32>
    %75 = arith.truncf %74 : vector<2x8xf32> to vector<2x8xbf16>
    %c0_38 = arith.constant 0 : index
    %c0_39 = arith.constant 0 : index
    %76 = vector.load %arg6[%c0_38, %c0_39] : memref<8x32xbf16, #tpu.memory_space<vmem>>, vector<8x32xbf16>
    %cst_40 = arith.constant dense<0.000000e+00> : vector<2x32xf32>
    %77 = tpu.matmul %75, %76, %cst_40 {dimension_numbers = #tpu.dot_dimension_numbers<[1], [0], [0], [1], [0, 0, 1, 1], [], []>} : vector<2x8xbf16>, vector<8x32xbf16>, vector<2x32xf32> -> vector<2x32xf32>
    %78 = vector.broadcast %5 : vector<1x32xf32> to vector<2x32xf32>
    %79 = arith.addf %77, %78 : vector<2x32xf32>
    %cst_41 = arith.constant 0.000000e+00 : f32
    %80 = vector.broadcast %cst_41 : f32 to vector<2x32xf32>
    %81 = arith.maximumf %79, %80 : vector<2x32xf32>
    %82 = tpu.concatenate %72, %81 in 1 : vector<2x32xf32>, vector<2x32xf32> -> vector<2x64xf32>
    %83 = arith.truncf %82 : vector<2x64xf32> to vector<2x64xbf16>
    %c0_42 = arith.constant 0 : index
    %c0_43 = arith.constant 0 : index
    %84 = vector.load %arg7[%c0_42, %c0_43] : memref<64x32xbf16, #tpu.memory_space<vmem>>, vector<64x32xbf16>
    %cst_44 = arith.constant dense<0.000000e+00> : vector<2x32xf32>
    %85 = tpu.matmul %83, %84, %cst_44 {dimension_numbers = #tpu.dot_dimension_numbers<[1], [0], [0], [1], [0, 0, 1, 1], [], []>} : vector<2x64xbf16>, vector<64x32xbf16>, vector<2x32xf32> -> vector<2x32xf32>
    %86 = vector.broadcast %6 : vector<1x32xf32> to vector<2x32xf32>
    %87 = arith.addf %85, %86 : vector<2x32xf32>
    %cst_45 = arith.constant 0.000000e+00 : f32
    %88 = vector.broadcast %cst_45 : f32 to vector<2x32xf32>
    %89 = arith.maximumf %87, %88 : vector<2x32xf32>
    %c0_46 = arith.constant 0 : index
    %c0_47 = arith.constant 0 : index
    %90 = vector.load %arg12[%c0_46, %c0_47] : memref<2x32xf32, #tpu.memory_space<vmem>>, vector<2x32xf32>
    %91 = arith.truncf %89 : vector<2x32xf32> to vector<2x32xbf16>
    %c0_48 = arith.constant 0 : index
    %c0_49 = arith.constant 0 : index
    %92 = vector.load %arg8[%c0_48, %c0_49] : memref<32x96xbf16, #tpu.memory_space<vmem>>, vector<32x96xbf16>
    %cst_50 = arith.constant dense<0.000000e+00> : vector<2x96xf32>
    %93 = tpu.matmul %91, %92, %cst_50 {dimension_numbers = #tpu.dot_dimension_numbers<[1], [0], [0], [1], [0, 0, 1, 1], [], []>} : vector<2x32xbf16>, vector<32x96xbf16>, vector<2x96xf32> -> vector<2x96xf32>
    %94 = vector.broadcast %7 : vector<1x96xf32> to vector<2x96xf32>
    %95 = arith.addf %93, %94 : vector<2x96xf32>
    %96 = arith.truncf %90 : vector<2x32xf32> to vector<2x32xbf16>
    %c0_51 = arith.constant 0 : index
    %c0_52 = arith.constant 0 : index
    %97 = vector.load %arg9[%c0_51, %c0_52] : memref<32x96xbf16, #tpu.memory_space<vmem>>, vector<32x96xbf16>
    %cst_53 = arith.constant dense<0.000000e+00> : vector<2x96xf32>
    %98 = tpu.matmul %96, %97, %cst_53 {dimension_numbers = #tpu.dot_dimension_numbers<[1], [0], [0], [1], [0, 0, 1, 1], [], []>} : vector<2x32xbf16>, vector<32x96xbf16>, vector<2x96xf32> -> vector<2x96xf32>
    %99 = vector.extract_strided_slice %95 {offsets = [0, 0], sizes = [2, 32], strides = [1, 1]} : vector<2x96xf32> to vector<2x32xf32>
    %100 = vector.extract_strided_slice %98 {offsets = [0, 0], sizes = [2, 32], strides = [1, 1]} : vector<2x96xf32> to vector<2x32xf32>
    %101 = arith.addf %99, %100 : vector<2x32xf32>
    %102 = arith.negf %101 : vector<2x32xf32>
    %103 = math.exp %102 : vector<2x32xf32>
    %cst_54 = arith.constant 1.000000e+00 : f32
    %104 = vector.broadcast %cst_54 : f32 to vector<2x32xf32>
    %105 = arith.addf %104, %103 : vector<2x32xf32>
    %106 = arith.divf %104, %105 : vector<2x32xf32>
    %107 = vector.extract_strided_slice %95 {offsets = [0, 32], sizes = [2, 32], strides = [1, 1]} : vector<2x96xf32> to vector<2x32xf32>
    %108 = vector.extract_strided_slice %98 {offsets = [0, 32], sizes = [2, 32], strides = [1, 1]} : vector<2x96xf32> to vector<2x32xf32>
    %109 = arith.addf %107, %108 : vector<2x32xf32>
    %110 = arith.negf %109 : vector<2x32xf32>
    %111 = math.exp %110 : vector<2x32xf32>
    %cst_55 = arith.constant 1.000000e+00 : f32
    %112 = vector.broadcast %cst_55 : f32 to vector<2x32xf32>
    %113 = arith.addf %112, %111 : vector<2x32xf32>
    %114 = arith.divf %112, %113 : vector<2x32xf32>
    %115 = vector.extract_strided_slice %95 {offsets = [0, 64], sizes = [2, 32], strides = [1, 1]} : vector<2x96xf32> to vector<2x32xf32>
    %116 = vector.extract_strided_slice %98 {offsets = [0, 64], sizes = [2, 32], strides = [1, 1]} : vector<2x96xf32> to vector<2x32xf32>
    %117 = vector.broadcast %8 : vector<1x32xf32> to vector<2x32xf32>
    %118 = arith.addf %116, %117 : vector<2x32xf32>
    %119 = arith.mulf %106, %118 : vector<2x32xf32>
    %120 = arith.addf %115, %119 : vector<2x32xf32>
    %121 = math.tanh %120 : vector<2x32xf32>
    %cst_56 = arith.constant 1.000000e+00 : f32
    %122 = vector.broadcast %cst_56 : f32 to vector<2x32xf32>
    %123 = arith.subf %122, %114 : vector<2x32xf32>
    %124 = arith.mulf %123, %121 : vector<2x32xf32>
    %125 = arith.mulf %114, %90 : vector<2x32xf32>
    %126 = arith.addf %124, %125 : vector<2x32xf32>
    %c0_57 = arith.constant 0 : index
    %c0_58 = arith.constant 0 : index
    %127 = vector.load %arg12[%c0_57, %c0_58] : memref<2x32xf32, #tpu.memory_space<vmem>>, vector<2x32xf32>
    tpu.vector_store %arg12[%c0_57, %c0_58], %126 {strides = array<i32>} : memref<2x32xf32, #tpu.memory_space<vmem>>, vector<2x32xf32>,
    %128 = vector.broadcast %9 : vector<1x32xf32> to vector<2x32xf32>
    %129 = arith.mulf %126, %128 : vector<2x32xf32>
    %cst_59 = arith.constant dense<0.000000e+00> : vector<2xf32>
    %130 = vector.multi_reduction <add>, %129, %cst_59 [1] : vector<2x32xf32> to vector<2xf32>
    %131 = vector.shape_cast %130 : vector<2xf32> to vector<2x1xf32>
    %132 = vector.broadcast %10 : vector<1x1xf32> to vector<2x1xf32>
    %133 = arith.addf %131, %132 : vector<2x1xf32>
    %cst_60 = arith.constant 0.000000e+00 : f32
    %134 = vector.broadcast %cst_60 : f32 to vector<2x95xf32>
    %135 = tpu.concatenate %126, %133, %134 in 1 : vector<2x32xf32>, vector<2x1xf32>, vector<2x95xf32> -> vector<2x128xf32>
    %c0_61 = arith.constant 0 : index
    %c0_62 = arith.constant 0 : index
    %c0_63 = arith.constant 0 : index
    %136 = vector.load %arg11[%c0_61, %c0_62, %c0_63] : memref<1x2x128xf32, #tpu.memory_space<vmem>>, vector<1x2x128xf32>
    %137 = vector.shape_cast %136 : vector<1x2x128xf32> to vector<2x128xf32>
    %138 = vector.shape_cast %135 : vector<2x128xf32> to vector<1x2x128xf32>
    tpu.vector_store %arg11[%c0_61, %c0_62, %c0_63], %138 {strides = array<i32>} : memref<1x2x128xf32, #tpu.memory_space<vmem>>, vector<1x2x128xf32>,
    return
  }
  func.func @transform_0(%arg0: i32) -> (i32, i32, i32) {
    %c0_i32 = arith.constant 0 : i32
    %c0_i32_0 = arith.constant 0 : i32
    %c0_i32_1 = arith.constant 0 : i32
    return %arg0, %c0_i32, %c0_i32_0 : i32, i32, i32
  }
  func.func @transform_1(%arg0: i32) -> (i32, i32, i32) {
    %c0_i32 = arith.constant 0 : i32
    %c0_i32_0 = arith.constant 0 : i32
    %c0_i32_1 = arith.constant 0 : i32
    return %arg0, %c0_i32, %c0_i32_0 : i32, i32, i32
  }
  func.func @transform_2(%arg0: i32) -> (i32, i32) {
    %c0_i32 = arith.constant 0 : i32
    %c0_i32_0 = arith.constant 0 : i32
    %c0_i32_1 = arith.constant 0 : i32
    return %c0_i32, %c0_i32_0 : i32, i32
  }
  func.func @transform_3(%arg0: i32) -> (i32, i32) {
    %c0_i32 = arith.constant 0 : i32
    %c0_i32_0 = arith.constant 0 : i32
    %c0_i32_1 = arith.constant 0 : i32
    return %c0_i32, %c0_i32_0 : i32, i32
  }
  func.func @transform_4(%arg0: i32) -> (i32, i32, i32) {
    %c0_i32 = arith.constant 0 : i32
    %c0_i32_0 = arith.constant 0 : i32
    %c0_i32_1 = arith.constant 0 : i32
    %c0_i32_2 = arith.constant 0 : i32
    return %c0_i32, %c0_i32_0, %c0_i32_1 : i32, i32, i32
  }
  func.func @transform_5(%arg0: i32) -> (i32, i32) {
    %c0_i32 = arith.constant 0 : i32
    %c0_i32_0 = arith.constant 0 : i32
    %c0_i32_1 = arith.constant 0 : i32
    return %c0_i32, %c0_i32_0 : i32, i32
  }
  func.func @transform_6(%arg0: i32) -> (i32, i32) {
    %c0_i32 = arith.constant 0 : i32
    %c0_i32_0 = arith.constant 0 : i32
    %c0_i32_1 = arith.constant 0 : i32
    return %c0_i32, %c0_i32_0 : i32, i32
  }
  func.func @transform_7(%arg0: i32) -> (i32, i32) {
    %c0_i32 = arith.constant 0 : i32
    %c0_i32_0 = arith.constant 0 : i32
    %c0_i32_1 = arith.constant 0 : i32
    return %c0_i32, %c0_i32_0 : i32, i32
  }
  func.func @transform_8(%arg0: i32) -> (i32, i32) {
    %c0_i32 = arith.constant 0 : i32
    %c0_i32_0 = arith.constant 0 : i32
    %c0_i32_1 = arith.constant 0 : i32
    return %c0_i32, %c0_i32_0 : i32, i32
  }
  func.func @transform_9(%arg0: i32) -> (i32, i32) {
    %c0_i32 = arith.constant 0 : i32
    %c0_i32_0 = arith.constant 0 : i32
    %c0_i32_1 = arith.constant 0 : i32
    return %c0_i32, %c0_i32_0 : i32, i32
  }
  func.func @transform_10(%arg0: i32) -> (i32, i32, i32) {
    %c0_i32 = arith.constant 0 : i32
    %c0_i32_0 = arith.constant 0 : i32
    %c0_i32_1 = arith.constant 0 : i32
    return %arg0, %c0_i32, %c0_i32_0 : i32, i32, i32
  }
}

</mosaic_0001>

<bundles_post_ra>
// kernel: tpu_custom_call.1
= control target key start
LH: loop header
LB: loop body
LE: loop exit
PB: predicated region body
PF: predicated region fallthrough
CT: control target
= control target key end

     0   :  { %15 = vsyncpa [#allocation4], 0  ;;  %s3898_s0 = inlined_call_operand.vmem [shape: bf16[8,72,256], index: 0, kind: input, shape index: {}]   ;;  %s3899_s1 = inlined_call_operand.vmem [shape: f32[8,2,8], index: 1, kind: input, shape index: {}]   ;;  %s3900_s2 = inlined_call_operand.vmem [shape: f32[2,32], index: 2, kind: input, shape index: {}]   ;;  %s3901_s3 = inlined_call_operand.vmem [shape: bf16[16,72], index: 3, kind: input, shape index: {}]   ;;  %s3902_s4 = inlined_call_operand.vmem [shape: bf16[8,256,32], index: 4, kind: input, shape index: {}]   ;;  %s3903_s5 = inlined_call_operand.vmem [shape: bf16[8,32], index: 5, kind: input, shape index: {}]   ;;  %s3904_s6 = inlined_call_operand.vmem [shape: bf16[64,32], index: 6, kind: input, shape index: {}]   ;;  %s3905_s7 = inlined_call_operand.vmem [shape: bf16[32,96], index: 7, kind: input, shape index: {}]   ;;  %s3906_s8 = inlined_call_operand.vmem [shape: bf16[32,96], index: 8, kind: input, shape index: {}]   ;;  %s3907_s9 = inlined_call_operand.vmem [shape: f32[32,128], index: 9, kind: input, shape index: {}]   ;;  %s3908_s10 = inlined_call_operand.hbm [shape: f32[8,2,128], index: 10, kind: output, shape index: {}]  }
   0x1   :  { %17 = vsyncpa [#allocation4 + $0x1], 0  ;;  %s3280_s13 = smov 0   ;;  %s3282_s14 = smov 0  }
   0x2   :  { %s3284_s15 = smov 0   ;;  %s3286_s16 = smov 0  }
   0x3 LB: > { %3911 = sst [smem:[#allocation6_spill]] %s3212_s15  ;;  %s3301_s17 = sadd.s32 4294967295, %s3216_s16   ;;  %s3216_s16 = sphi %s3286_s16, %s3920_s16   ;;  %s3212_s15 = sphi %s3284_s15, %s3917_s15   ;;  %s3208_s14 = sphi %s3282_s14, %s3919_s14   ;;  %s3204_s13 = sphi %s3280_s13, %s3918_s13  }
   0x4   : > { %s2337_s18 = sadd.s32 4294967294, %s3216_s16   ;;  %s3305_s19 = sadd.s32 1, %s3216_s16  }
   0x5   : > { %s250_s20 = sadd.s32 1, %s3212_s15  ;;  %s247_s21 = ssub.s32 %s3216_s16, %s3305_s19 }
   0x6   : > { %p260_p0 = scmp.ne.s32.totalorder %s3212_s15, %s3208_s14  ;;  %p248_p1 = scmp.eq.s32.totalorder %s247_s21, 0 }
   0x7   : > { %p261_p2 = scmp.eq.s32.totalorder %s3301_s17, 7  ;;  %p266_p3 = scmp.ne.s32.totalorder %s3208_s14, %s3204_s13 }
   0x8   : > { %p267_p4 = scmp.eq.s32.totalorder %s2337_s18, 7  ;;  %p2340_p7 = scmp.ge.s32.totalorder %s3216_s16, 1 }
   0x9   : > { %s3316_s22 = scalar_select %p248_p1, %s3212_s15, %s250_s20  }
   0xa   : > { %p3318_p5 = por %p261_p2, %p260_p0  ;;  %p3322_p6 = por %p267_p4, %p266_p3 }
   0xb   : > { %3912 = sst [smem:[#allocation7_spill]] %s3316_s22  ;;  %p324_p8 = scmp.lt.s32.totalorder %s3216_s16, 9 }
   0xd   : > { %p325_p9 = pnand %p2340_p7, %p324_p8 }
   0xe   : > { %s3910_s25 = sand.u32 (!%p325_p9), 1, %s3208_s14   ;;  %p366_p10 = scmp.lt.s32.totalorder (!%p325_p9), %s3301_s17, 7 }
   0xf   : > { %328 = sbr.rel (%p325_p9) target bundleno = 1814 (0x716), region = 60  ;;  %s3332_s26 = sshll.u32 (!%p325_p9), %s3910_s25, 1 }
  0x10   : > { %s365_s22 = scalar_lea.vmem (!%p325_p9), [#allocation3], %s3332_s26  ;;  %p2344_p11 = scmp.ne.s32.totalorder (!%p325_p9), %s3301_s17, 0 }
  0x16   : > { %s367_s27 = scalar_select %p366_p10, %s3301_s17, 7 }
  0x17   : > { %379 = sbr.rel (%p2344_p11) target bundleno = 30 (0x1e), region = 64  ;;  %v380_v0 = vld [vmem:[%s3900_s2] sm:$0x3] (!%p2344_p11)  ;;  %vm381_vm0 = vcmask (!%p2344_p11), 254976  }
  0x18   : > { %s2950_s28 = smul.u32 72, %s367_s27  ;;  %s2343_s29 = sshll.u32 %s367_s27, 1  ;;  %382 = vst.msk [vmem:[#allocation2] sm:$0x3] (!%p2344_p11), %vm381_vm0, %v380_v0 }
  0x19   : > { %s3338_s12 = scalar_lea.vmem %s3899_s1, %s2343_s29 }
  0x1a   : > { %s370_s21 = scalar_lea.vmem %s3898_s0, %s2950_s28 }
  0x1e PF: > { %v2997_v1 = vld [vmem:[%s370_s21 + $0x4] ss:$8 sps:$4 sm:$0xff]   ;;  %v2999_v2 = vld [vmem:[%s370_s21] ss:$8 sps:$4 sm:$0xff]   ;;  %v3218_v3 = vmov 0   ;;  %v385_v10 = vld [vmem:[%s3907_s9 + $0x10] sm:$0xff] }
  0x1f   : > { %500 = vmatprep.mubr.bf16.mxu0 %v3218_v3  ;;  %2996 = vset.pattern.permute.xlu0 %v3218_v3  ;;  %v3000_v4 = vld [vmem:[%s370_s21 + $0x14] ss:$8 sps:$4 sm:$0xff]   ;;  %v3002_v5 = vld [vmem:[%s370_s21 + $0x10] ss:$8 sps:$4 sm:$0xff]   ;;  %v3003_v6 = vld [vmem:[%s370_s21 + $0x24] ss:$8 sps:$4 sm:$0xff]  }
  0x20   : > { %468 = vmatprep.subr.bf16.mxu0 %v2997_v1  ;;  %v3005_v7 = vld [vmem:[%s370_s21 + $0x20] ss:$8 sps:$4 sm:$0xff]   ;;  %v3006_v9 = vld [vmem:[%s370_s21 + $0x34] ss:$8 sps:$4 sm:$0xff]   ;;  %v3008_v11 = vld [vmem:[%s370_s21 + $0x30] ss:$8 sps:$4 sm:$0xff]  }
  0x21   : > { %469 = vmatpush1.bf16.msra.mxu0 %v2999_v2  ;;  %v384_v8 = vld [vmem:[%s3907_s9 + $0x8] sm:$0xff]  ;;  %v396_v12 = vld [vmem:[%s370_s21 + $0x40] sm:$0xff]  ;;  %vm461_vm1 = vcmask 1043456   ;;  %v3022_v23 = vld [vmem:[%s3902_s4 + $0xd0] sm:$0xff]   ;;  %vm457_vm2 = vcmask 588800   ;;  %vm3220_vm3 = vmmov 0  }
  0x22   : > { %470 = vmatprep.subr.bf16.mxu0 %v3000_v4  ;;  %399 = vperm.xlu0 %2996, %v384_v8   ;;  %v3014_v13 = vld [vmem:[%s3902_s4 + $0xc0] sm:$0xff]   ;;  %v2355_v15 = vcombine.high %v396_v12, %v396_v12  ;;  %v2354_v16 = vcombine.low %v396_v12, %v396_v12  ;;  %v3018_v17 = vld [vmem:[%s3902_s4 + $0xc8] sm:$0xff]   ;;  %v3023_v24 = vld [vmem:[%s3902_s4 + $0x90] sm:$0xff]   ;;  %vm1917_vm4 = vcmask 64512   ;;  %s3221_s25 = smov 32   ;;  %vm1969_vm5 = vcmask 261120  }
  0x23   : > { %v3015_v14 = vld [vmem:[%s3902_s4 + $0x80] sm:$0xff]   ;;  %2727 = vmatprep.subr.bf16.mxu1 %v3014_v13  ;;  %v3019_v18 = vld [vmem:[%s3902_s4 + $0x88] sm:$0xff]   ;;  %v3026_v27 = vld [vmem:[%s3902_s4 + $0xd8] sm:$0xff]   ;;  %vm2008_vm6 = vcmask 523264   ;;  %s3222_s28 = smov 64   ;;  %s3223_s15 = smov 96  }
  0x24   : > { %2728 = vmatpush3.bf16.msra.mxu1 %v3015_v14  ;;  %v463_v19 = vsel %vm461_vm1, %v2354_v16, 0  ;;  %v3011_v20 = vld [vmem:[%s3901_s3] sm:$0xff]   ;;  %v3016_v25 = vld [vmem:[%s3902_s4 + $0x48] sm:$0xff]   ;;  %v3027_v28 = vld [vmem:[%s3902_s4 + $0x98] sm:$0xff]   ;;  %vm2221_vm7 = vcmask 254976   ;;  %s2724_s29 = sshll.u32 %s3301_s17, 5 }
  0x25   : > { %471 = vmatpush1.bf16.msra.mxu0 %v3002_v5  ;;  %v3012_v21 = vld [vmem:[%s3902_s4 + $0x40] sm:$0xff]   ;;  %2729 = vmatprep.subr.bf16.mxu1 %v3018_v17  ;;  %v3017_v26 = vld [vmem:[%s3902_s4 + $0x8] sm:$0xff]   ;;  %v3020_v29 = vld [vmem:[%s3902_s4 + $0x50] sm:$0xff]   ;;  %s2266_s30 = sshll.u32 %s365_s22, 4  ;;  %vm2249_vm8 = vcmask 269312   ;;  %s3915_s17 = sand.u32 1, %s3208_s14   ;;  %s3854_s30 = int_to_ptr.vmem [resolvable:$true] %s2266_s30 }
  0x26   : > { %472 = vmatprep.subr.bf16.mxu0 %v3003_v6  ;;  %404 = vperm.xlu0 %2996, %v385_v10   ;;  %v3013_v22 = vld [vmem:[%s3902_s4] sm:$0xff]   ;;  %v3021_v30 = vld [vmem:[%s3902_s4 + $0x10] sm:$0xff]   ;;  %v3024_v33 = vld [vmem:[%s3902_s4 + $0x58] sm:$0xff]   ;;  %s3154_s20 = scalar_lea.vmem %s3854_s30, 32  ;;  %s3224_s27 = smov [#allocation3]  }
  0x27   : > { %v3030_v31 = vld [vmem:[%s3902_s4 + $0xe0] sm:$0xff]   ;;  %v3025_v34 = vld [vmem:[%s3902_s4 + $0x18] sm:$0xff]   ;;  %v3034_v36 = vld [vmem:[%s3902_s4 + $0xe8] sm:$0xff]   ;;  %p3155_p12 = scmp.ne.s32.totalorder %s3854_s30, %s3154_s20  ;;  %s3158_s21 = sshll.u32 %s3224_s27, 4  ;;  %s3159_s21 = int_to_ptr.vmem [resolvable:$false] %s3158_s21 }
  0x28   : > { %2730 = vmatpush3.bf16.msra.mxu1 %v3019_v18  ;;  %v3031_v32 = vld [vmem:[%s3902_s4 + $0xa0] sm:$0xff]   ;;  %v3035_v37 = vld [vmem:[%s3902_s4 + $0xa8] sm:$0xff]   ;;  %v3036_v41 = vld [vmem:[%s3902_s4 + $0x70] sm:$0xff]   ;;  %p3161_p1 = scmp.lt.s32.totalorder %s3854_s30, %s3159_s21 }
  0x29   : > { %473 = vmatpush1.bf16.msra.mxu0 %v3005_v7  ;;  %2731 = vmatprep.subr.bf16.mxu1 %v3022_v23  ;;  %v3028_v35 = vld [vmem:[%s3902_s4 + $0x60] sm:$0xff]   ;;  %v3032_v39 = vld [vmem:[%s3902_s4 + $0x68] sm:$0xff]   ;;  %v3037_v42 = vld [vmem:[%s3902_s4 + $0x30] sm:$0xff]   ;;  %p3156_p13 = pnand %p3155_p12, %p3318_p5 }
  0x2a   : > { %474 = vmatprep.subr.bf16.mxu0 %v3006_v9  ;;  %v3029_v38 = vld [vmem:[%s3902_s4 + $0x20] sm:$0xff]   ;;  %v3033_v40 = vld [vmem:[%s3902_s4 + $0x28] sm:$0xff]   ;;  %v3038_v43 = vld [vmem:[%s3902_s4 + $0xf0] sm:$0xff]  }
  0x2b   : > { %v3039_v44 = vld [vmem:[%s3902_s4 + $0xb0] sm:$0xff]   ;;  %v3040_v45 = vld [vmem:[%s3902_s4 + $0x78] sm:$0xff]   ;;  %v3044_v49 = vld [vmem:[%s3902_s4 + $0x1c0] sm:$0xff]   ;;  %p3157_p0 = pneg %p3156_p13 }
  0x2c   : > { %2732 = vmatpush3.bf16.msra.mxu1 %v3023_v24  ;;  %v3041_v46 = vld [vmem:[%s3902_s4 + $0x38] sm:$0xff]   ;;  %v3046_v50 = vld [vmem:[%s3902_s4 + $0x140] sm:$0xff]   ;;  %v3048_v3 = vld [vmem:[%s3902_s4 + $0x1c8] sm:$0xff]  }
  0x2d   : > { %475 = vmatpush1.bf16.msra.mxu0 %v3008_v11  ;;  %2733 = vmatprep.subr.bf16.mxu1 %v3026_v27  ;;  %v3042_v47 = vld [vmem:[%s3902_s4 + $0xf8] sm:$0xff]   ;;  %v3045_v62 = vld [vmem:[%s3902_s4 + $0x180] sm:$0xff]   ;;  %v3050_v4 = vld [vmem:[%s3902_s4 + $0x148] sm:$0xff]  }
  0x2e   : > { %2356 = vmatprep.subr.msk.bf16.mxu0 %vm461_vm1, %v2355_v15  ;;  %v3043_v48 = vld [vmem:[%s3902_s4 + $0xb8] sm:$0xff]   ;;  %v3047_v1 = vld [vmem:[%s3902_s4 + $0x100] sm:$0xff]   ;;  %v3049_v6 = vld [vmem:[%s3902_s4 + $0x188] sm:$0xff]  }
  0x2f   : > { %v3052_v7 = vld [vmem:[%s3902_s4 + $0x1d0] sm:$0xff]   ;;  %v3051_v8 = vld [vmem:[%s3902_s4 + $0x108] sm:$0xff]   ;;  %v3056_v11 = vld [vmem:[%s3902_s4 + $0x1d8] sm:$0xff]  }
  0x30   : > { %2734 = vmatpush3.bf16.msra.mxu1 %v3027_v28  ;;  %v3054_v9 = vld [vmem:[%s3902_s4 + $0x150] sm:$0xff]   ;;  %v3058_v13 = vld [vmem:[%s3902_s4 + $0x158] sm:$0xff]   ;;  %v3060_v15 = vld [vmem:[%s3902_s4 + $0x1e0] sm:$0xff]  }
  0x31   : > { %477 = vmatpush1.bf16.msra.mxu0 %v463_v19  ;;  %2735 = vmatprep.subr.bf16.mxu1 %v3030_v31  ;;  %v3053_v10 = vld [vmem:[%s3902_s4 + $0x190] sm:$0xff]   ;;  %v3057_v14 = vld [vmem:[%s3902_s4 + $0x198] sm:$0xff]   ;;  %v3062_v17 = vld [vmem:[%s3902_s4 + $0x160] sm:$0xff]  }
  0x32   : > { %2749 = vmatprep.subr.bf16.mxu0 %v3012_v21  ;;  %v3055_v12 = vld [vmem:[%s3902_s4 + $0x110] sm:$0xff]   ;;  %v3059_v16 = vld [vmem:[%s3902_s4 + $0x118] sm:$0xff]   ;;  %v3061_v18 = vld [vmem:[%s3902_s4 + $0x1a0] sm:$0xff]  }
  0x33   : > { %v3064_v19 = vld [vmem:[%s3902_s4 + $0x1e8] sm:$0xff]   ;;  %v3068_v24 = vld [vmem:[%s3902_s4 + $0x1f0] sm:$0xff]  }
  0x34   : > { %2357 = vmatmul.mubr.msk.bf16.vlgmr.msra.gmra.mrb[0].mxu0 %vm457_vm2, %v3011_v20  ;;  %2736 = vmatpush3.bf16.msra.mxu1 %v3031_v32  ;;  %v3063_v20 = vld [vmem:[%s3902_s4 + $0x120] sm:$0xff]   ;;  %v3066_v21 = vld [vmem:[%s3902_s4 + $0x168] sm:$0xff]   ;;  %v3070_v27 = vld [vmem:[%s3902_s4 + $0x170] sm:$0xff]  }
  0x35   : > { %2750 = vmatpush3.bf16.msra.mxu0 %v3013_v22  ;;  %2737 = vmatprep.subr.bf16.mxu1 %v3034_v36  ;;  %v3065_v22 = vld [vmem:[%s3902_s4 + $0x1a8] sm:$0xff]   ;;  %v3069_v28 = vld [vmem:[%s3902_s4 + $0x1b0] sm:$0xff]   ;;  %v3074_v32 = vld [vmem:[%s3902_s4 + $0x178] sm:$0xff]  }
  0x36   : > { %2751 = vmatprep.subr.bf16.mxu0 %v3016_v25  ;;  %v3071_v31 = vld [vmem:[%s3902_s4 + $0x130] sm:$0xff]   ;;  %v3075_v36 = vld [vmem:[%s3902_s4 + $0x138] sm:$0xff]  }
  0x38   : > { %2738 = vmatpush3.bf16.msra.mxu1 %v3035_v37  ;;  %v3078_v37 = vld [vmem:[%s3902_s4 + $0x240] sm:$0xff]  }
  0x39   : > { %2752 = vmatpush3.bf16.msra.mxu0 %v3017_v26  ;;  %2739 = vmatprep.subr.bf16.mxu1 %v3038_v43  ;;  %v3067_v26 = vld [vmem:[%s3902_s4 + $0x128] sm:$0xff]  }
  0x3a   : > { %2753 = vmatprep.subr.bf16.mxu0 %v3020_v29  ;;  %v3072_v29 = vld [vmem:[%s3902_s4 + $0x1f8] sm:$0xff]  }
  0x3c   : > { %2740 = vmatpush3.bf16.msra.mxu1 %v3039_v44  ;;  %v3082_v44 = vld [vmem:[%s3902_s4 + $0x248] sm:$0xff]  }
  0x3d   : > { %2754 = vmatpush3.bf16.msra.mxu0 %v3021_v30  ;;  %2741 = vmatprep.subr.bf16.mxu1 %v3042_v47  ;;  %v3083_v47 = vld [vmem:[%s3902_s4 + $0x208] sm:$0xff]  }
  0x3e   : > { %2755 = vmatprep.subr.bf16.mxu0 %v3024_v33  ;;  %v3073_v33 = vld [vmem:[%s3902_s4 + $0x1b8] sm:$0xff]  }
  0x40   : > { %2742 = vmatpush3.bf16.msra.mxu1 %v3043_v48  ;;  %v3086_v48 = vld [vmem:[%s3902_s4 + $0x250] sm:$0xff]  }
  0x41   : > { %2756 = vmatpush3.bf16.msra.mxu0 %v3025_v34  ;;  %2771 = vmatprep.subr.bf16.mxu1 %v3046_v50  ;;  %v3076_v34 = vld [vmem:[%s3902_s4 + $0x2c0] sm:$0xff]   ;;  %v3088_v50 = vld [vmem:[%s3902_s4 + $0x2d8] sm:$0xff]  }
  0x42   : > { %2757 = vmatprep.subr.bf16.mxu0 %v3028_v35 }
  0x45   : > { %2758 = vmatpush3.bf16.msra.mxu0 %v3029_v38  ;;  %v3077_v38 = vld [vmem:[%s3902_s4 + $0x280] sm:$0xff]  }
  0x46   : > { %2759 = vmatprep.subr.bf16.mxu0 %v3032_v39 }
  0x49   : > { %2760 = vmatpush3.bf16.msra.mxu0 %v3033_v40  ;;  %v3080_v40 = vld [vmem:[%s3902_s4 + $0x2c8] sm:$0xff]  }
  0x4a   : > { %2761 = vmatprep.subr.bf16.mxu0 %v3036_v41 }
  0x4d   : > { %2762 = vmatpush3.bf16.msra.mxu0 %v3037_v42  ;;  %v3079_v42 = vld [vmem:[%s3902_s4 + $0x200] sm:$0xff]  }
  0x4e   : > { %2763 = vmatprep.subr.bf16.mxu0 %v3040_v45  ;;  %v3081_v45 = vld [vmem:[%s3902_s4 + $0x288] sm:$0xff]  }
  0x51   : > { %2764 = vmatpush3.bf16.msra.mxu0 %v3041_v46  ;;  %v3084_v46 = vld [vmem:[%s3902_s4 + $0x2d0] sm:$0xff]  }
  0x52   : > { %2793 = vmatprep.subr.bf16.mxu0 %v3044_v49  ;;  %v3085_v49 = vld [vmem:[%s3902_s4 + $0x290] sm:$0xff]  }
  0xa1   : > { %v400_v51 = vpop.permute.xlu0 %399 }
  0xa5   : > { %v3530_v23 = vpop.permute.xlu0 %404 }
 0x107   : > { %v502_v52 = vpop.f32.mrb[0].mxu0 }
 0x108   : > { %v503_v53 = vadd.f32 %v502_v52, %v400_v51  ;;  %v504_v54 = vpop.f32.mrb[1].mxu0  ;;  %v3090_v52 = vld [vmem:[%s3902_s4 + $0x258] sm:$0xff]  }
 0x109   : > { %v505_v55 = vadd.f32 %v504_v54, %v400_v51  ;;  %v3461_v56 = vpop.f32.mrb[2].mxu0  ;;  %v3087_v51 = vld [vmem:[%s3902_s4 + $0x210] sm:$0xff]   ;;  %v3092_v54 = vld [vmem:[%s3902_s4 + $0x2e0] sm:$0xff]  }
 0x10a   : > { %v511_v57 = vmax.f32 %v503_v53, 0.0  ;;  %v508_v58 = vpop.f32.mrb[3].mxu0  ;;  %v3089_v53 = vld [vmem:[%s3902_s4 + $0x298] sm:$0xff]  }
 0x10b   : > { %v512_v59 = vmax.f32 %v505_v55, 0.0  ;;  %v509_v25 = vadd.f32 %v508_v58, %v3530_v23  ;;  %v3091_v55 = vld [vmem:[%s3902_s4 + $0x218] sm:$0xff]   ;;  %v3093_v58 = vld [vmem:[%s3902_s4 + $0x2a0] sm:$0xff]  }
 0x10c   : > { %v3463_v60 = vpack.c.bf16 %v511_v57, %v511_v57  ;;  %v3094_v57 = vld [vmem:[%s3902_s4 + $0x260] sm:$0xff]  }
 0x10d   : > { %v516_v61 = vpack.c.bf16 %v512_v59, %v512_v59  ;;  %v514_v30 = vmax.f32 %v509_v25, 0.0  ;;  %v3096_v59 = vld [vmem:[%s3902_s4 + $0x2e8] sm:$0xff]   ;;  %v3119_v25 = vld [vmem:[%s3902_s4 + $0x310] sm:$0xff]  }
 0x10e   : > { %v584_v2 = vrot.slane %v3463_v60, 1  ;;  %v1067_v39 = vrot.slane %v3463_v60, 3  ;;  %v893_v43 = vrot.slane %v3463_v60, 2 }
 0x10f   : > { %852 = vmatprep.mubr.bf16.mxu0 %v516_v61  ;;  %v585_v63 = vrot.slane %v516_v61, 1  ;;  %v1068_v0 = vrot.slane %v516_v61, 3  ;;  %v894_v5 = vrot.slane %v516_v61, 2  ;;  %v3560_v35 = vpack.c.bf16 %v514_v30, %v514_v30  ;;  %v3098_v61 = vld [vmem:[%s3902_s4 + $0x268] sm:$0xff]   ;;  %v3126_v30 = vld [vmem:[%s3902_s4 + $0x360] sm:$0xff]  }
 0x110   : > { %853 = vmatmul.mubr.bf16.vlgmr.msra.gmra.mrb[4].mxu0 %v3463_v60  ;;  %v3095_v60 = vld [vmem:[%s3902_s4 + $0x220] sm:$0xff]  }
 0x111   : > { %2794 = vmatpush3.bf16.msra.mxu0 %v3045_v62  ;;  %716 = vmatprep.mubr.bf16.mxu1 %v585_v63  ;;  %v1416_v41 = vrot.slane %v3560_v35, 1  ;;  %v3097_v62 = vld [vmem:[%s3902_s4 + $0x2a8] sm:$0xff]   ;;  %v507_v63 = vadd.f32 %v3461_v56, %v3530_v23  ;;  %v3101_v56 = vld [vmem:[%s3902_s4 + $0x2b0] sm:$0xff]  }
 0x112   : > { %1199 = vmatprep.mubr.bf16.mxu0 %v1068_v0  ;;  %717 = vmatmul.mubr.bf16.vlgmr.msra.gmra.mrb[0].mxu1 %v584_v2  ;;  %v3100_v0 = vld [vmem:[%s3902_s4 + $0x2f0] sm:$0xff]  }
 0x113   : > { %2772 = vmatpush3.bf16.msra.mxu1 %v3047_v1  ;;  %1025 = vmatprep.mubr.bf16.mxu1 %v894_v5  ;;  %v3099_v1 = vld [vmem:[%s3902_s4 + $0x228] sm:$0xff]   ;;  %v3102_v2 = vld [vmem:[%s3902_s4 + $0x270] sm:$0xff]  }
 0x114   : > { %2795 = vmatprep.subr.bf16.mxu0 %v3048_v3  ;;  %2773 = vmatprep.subr.bf16.mxu1 %v3050_v4  ;;  %v513_v3 = vmax.f32 %v507_v63, 0.0  ;;  %v3104_v4 = vld [vmem:[%s3902_s4 + $0x2f8] sm:$0xff]   ;;  %v3103_v5 = vld [vmem:[%s3902_s4 + $0x230] sm:$0xff]  }
 0x115   : > { %2796 = vmatpush3.bf16.msra.mxu0 %v3049_v6  ;;  %v3106_v6 = vld [vmem:[%s3902_s4 + $0x278] sm:$0xff]   ;;  %v3117_v23 = vld [vmem:[%s3902_s4 + $0x390] sm:$0xff]  }
 0x116   : > { %2797 = vmatprep.subr.bf16.mxu0 %v3052_v7  ;;  %v3105_v7 = vld [vmem:[%s3902_s4 + $0x2b8] sm:$0xff]  }
 0x117   : > { %2774 = vmatpush3.bf16.msra.mxu1 %v3051_v8  ;;  %v3661_v8 = vpack.c.bf16 %v513_v3, %v513_v3 }
 0x118   : > { %2775 = vmatprep.subr.bf16.mxu1 %v3054_v9  ;;  %v3108_v9 = vld [vmem:[%s3902_s4 + $0x3c0] sm:$0xff]  }
 0x119   : > { %2798 = vmatpush3.bf16.msra.mxu0 %v3053_v10  ;;  %v3107_v10 = vld [vmem:[%s3902_s4 + $0x238] sm:$0xff]  }
 0x11a   : > { %2799 = vmatprep.subr.bf16.mxu0 %v3056_v11  ;;  %v3110_v11 = vld [vmem:[%s3902_s4 + $0x340] sm:$0xff]  }
 0x11b   : > { %2776 = vmatpush3.bf16.msra.mxu1 %v3055_v12  ;;  %v3109_v12 = vld [vmem:[%s3902_s4 + $0x380] sm:$0xff]  }
 0x11c   : > { %2777 = vmatprep.subr.bf16.mxu1 %v3058_v13  ;;  %v1415_v13 = vrot.slane %v3661_v8, 1 }
 0x11d   : > { %2800 = vmatpush3.bf16.msra.mxu0 %v3057_v14  ;;  %v3112_v14 = vld [vmem:[%s3902_s4 + $0x3c8] sm:$0xff]  }
 0x11e   : > { %2801 = vmatprep.subr.bf16.mxu0 %v3060_v15  ;;  %v1764_v15 = vrot.slane %v3560_v35, 3 }
 0x11f   : > { %2778 = vmatpush3.bf16.msra.mxu1 %v3059_v16  ;;  %v3111_v16 = vld [vmem:[%s3902_s4 + $0x300] sm:$0xff]  }
 0x120   : > { %2779 = vmatprep.subr.bf16.mxu1 %v3062_v17  ;;  %v3114_v17 = vld [vmem:[%s3902_s4 + $0x348] sm:$0xff]  }
 0x121   : > { %2802 = vmatpush3.bf16.msra.mxu0 %v3061_v18  ;;  %v1590_v18 = vrot.slane %v3560_v35, 2 }
 0x122   : > { %2803 = vmatprep.subr.bf16.mxu0 %v3064_v19  ;;  %v3113_v19 = vld [vmem:[%s3902_s4 + $0x388] sm:$0xff]  }
 0x123   : > { %2780 = vmatpush3.bf16.msra.mxu1 %v3063_v20  ;;  %v3116_v20 = vld [vmem:[%s3902_s4 + $0x3d0] sm:$0xff]  }
 0x124   : > { %2781 = vmatprep.subr.bf16.mxu1 %v3066_v21  ;;  %v3115_v21 = vld [vmem:[%s3902_s4 + $0x308] sm:$0xff]  }
 0x125   : > { %2804 = vmatpush3.bf16.msra.mxu0 %v3065_v22  ;;  %v3118_v22 = vld [vmem:[%s3902_s4 + $0x350] sm:$0xff]  }
 0x126   : > { %2805 = vmatprep.subr.bf16.mxu0 %v3068_v24  ;;  %v3120_v24 = vld [vmem:[%s3902_s4 + $0x3d8] sm:$0xff]  }
 0x127   : > { %2782 = vmatpush3.bf16.msra.mxu1 %v3067_v26  ;;  %v3122_v26 = vld [vmem:[%s3902_s4 + $0x358] sm:$0xff]  }
 0x128   : > { %2783 = vmatprep.subr.bf16.mxu1 %v3070_v27  ;;  %v3121_v27 = vld [vmem:[%s3902_s4 + $0x398] sm:$0xff]  }
 0x129   : > { %2806 = vmatpush3.bf16.msra.mxu0 %v3069_v28  ;;  %v3124_v28 = vld [vmem:[%s3902_s4 + $0x3e0] sm:$0xff]  }
 0x12a   : > { %2807 = vmatprep.subr.bf16.mxu0 %v3072_v29  ;;  %v3123_v29 = vld [vmem:[%s3902_s4 + $0x318] sm:$0xff]  }
 0x12b   : > { %2784 = vmatpush3.bf16.msra.mxu1 %v3071_v31  ;;  %v3125_v31 = vld [vmem:[%s3902_s4 + $0x3a0] sm:$0xff]  }
 0x12c   : > { %2785 = vmatprep.subr.bf16.mxu1 %v3074_v32  ;;  %v3128_v32 = vld [vmem:[%s3902_s4 + $0x3e8] sm:$0xff]  }
 0x12d   : > { %2808 = vmatpush3.bf16.msra.mxu0 %v3073_v33  ;;  %v3127_v33 = vld [vmem:[%s3902_s4 + $0x320] sm:$0xff]  }
 0x12e   : > { %2837 = vmatprep.subr.bf16.mxu0 %v3076_v34  ;;  %v3130_v34 = vld [vmem:[%s3902_s4 + $0x368] sm:$0xff]  }
 0x12f   : > { %2786 = vmatpush3.bf16.msra.mxu1 %v3075_v36  ;;  %v3132_v36 = vld [vmem:[%s3902_s4 + $0x3f0] sm:$0xff]  }
 0x130   : > { %1200 = vmatmul.mubr.bf16.vlgmr.msra.gmra.mrb[8].mxu0 %v1067_v39  ;;  %2815 = vmatprep.subr.bf16.mxu1 %v3078_v37  ;;  %v3131_v37 = vld [vmem:[%s3902_s4 + $0x328] sm:$0xff]   ;;  %v3133_v39 = vld [vmem:[%s3902_s4 + $0x3b0] sm:$0xff]  }
 0x131   : > { %2838 = vmatpush3.bf16.msra.mxu0 %v3077_v38  ;;  %1547 = vmatprep.mubr.bf16.mxu0 %v1416_v41  ;;  %v3134_v38 = vld [vmem:[%s3902_s4 + $0x370] sm:$0xff]  }
 0x132   : > { %1026 = vmatmul.mubr.bf16.vlgmr.msra.gmra.mrb[4].mxu1 %v893_v43  ;;  %2839 = vmatprep.subr.bf16.mxu0 %v3080_v40  ;;  %v3136_v40 = vld [vmem:[%s3902_s4 + $0x3f8] sm:$0xff]   ;;  %v3135_v41 = vld [vmem:[%s3902_s4 + $0x330] sm:$0xff]  }
 0x133   : > { %2816 = vmatpush3.bf16.msra.mxu1 %v3079_v42  ;;  %1371 = vmatprep.mubr.bf16.mxu1 %v3560_v35  ;;  %v3129_v35 = vld [vmem:[%s3902_s4 + $0x3a8] sm:$0xff]   ;;  %v3138_v42 = vld [vmem:[%s3902_s4 + $0x378] sm:$0xff]  }
 0x134   : > { %2817 = vmatprep.subr.bf16.mxu1 %v3082_v44  ;;  %v3137_v43 = vld [vmem:[%s3902_s4 + $0x3b8] sm:$0xff]  }
 0x135   : > { %2840 = vmatpush3.bf16.msra.mxu0 %v3081_v45  ;;  %v3139_v44 = vld [vmem:[%s3902_s4 + $0x338] sm:$0xff]   ;;  %v1912_v45 = vld [vmem:[%s3903_s5] sm:$0xf] }
 0x136   : > { %2841 = vmatprep.subr.bf16.mxu0 %v3084_v46  ;;  %v1763_v46 = vrot.slane %v3661_v8, 3 }
 0x137   : > { %2818 = vmatpush3.bf16.msra.mxu1 %v3083_v47  ;;  %v3219_v47 = vmov 0.0  }
 0x138   : > { %2819 = vmatprep.subr.bf16.mxu1 %v3086_v48  ;;  %v1589_v48 = vrot.slane %v3661_v8, 2 }
 0x139   : > { %2842 = vmatpush3.bf16.msra.mxu0 %v3085_v49  ;;  %v1922_v49 = vsel %vm461_vm1, %v1912_v45, 0 }
 0x13a   : > { %2843 = vmatprep.subr.bf16.mxu0 %v3088_v50  ;;  %v1910_v50 = vld [vmem:[%s3338_s12] sm:$0x3]  ;;  %s3852_s12 = scalar_lea.hbm %s3908_s10, %s2724_s29 }
 0x13b   : > { %2820 = vmatpush3.bf16.msra.mxu1 %v3087_v51  ;;  %v1911_v51 = vpack.c.bf16 %v1910_v50, %v1910_v50 }
 0x13c   : > { %2821 = vmatprep.subr.bf16.mxu1 %v3090_v52  ;;  %v3140_v52 = vld [vmem:[%s3904_s6] sm:$0xff]  }
 0x13d   : > { %2844 = vmatpush3.bf16.msra.mxu0 %v3089_v53  ;;  %v3141_v53 = vld [vmem:[%s3904_s6 + $0x8] sm:$0xff]  }
 0x13e   : > { %2845 = vmatprep.subr.bf16.mxu0 %v3092_v54  ;;  %v3142_v54 = vld [vmem:[%s3904_s6 + $0x10] sm:$0xff]  }
 0x13f   : > { %2822 = vmatpush3.bf16.msra.mxu1 %v3091_v55 }
 0x140   : > { %2823 = vmatprep.subr.bf16.mxu1 %v3094_v57 }
 0x141   : > { %2846 = vmatpush3.bf16.msra.mxu0 %v3093_v58 }
 0x142   : > { %2847 = vmatprep.subr.bf16.mxu0 %v3096_v59 }
 0x143   : > { %2824 = vmatpush3.bf16.msra.mxu1 %v3095_v60 }
 0x144   : > { %2825 = vmatprep.subr.bf16.mxu1 %v3098_v61 }
 0x145   : > { %2848 = vmatpush3.bf16.msra.mxu0 %v3097_v62 }
 0x146   : > { %2849 = vmatprep.subr.bf16.mxu0 %v3100_v0 }
 0x147   : > { %2826 = vmatpush3.bf16.msra.mxu1 %v3099_v1 }
 0x148   : > { %2827 = vmatprep.subr.bf16.mxu1 %v3102_v2 }
 0x149   : > { %2850 = vmatpush3.bf16.msra.mxu0 %v3101_v56 }
 0x14a   : > { %2851 = vmatprep.subr.bf16.mxu0 %v3104_v4 }
 0x14b   : > { %2828 = vmatpush3.bf16.msra.mxu1 %v3103_v5 }
 0x14c   : > { %2829 = vmatprep.subr.bf16.mxu1 %v3106_v6 }
 0x14d   : > { %2852 = vmatpush3.bf16.msra.mxu0 %v3105_v7 }
 0x14e   : > { %2881 = vmatprep.subr.bf16.mxu0 %v3108_v9 }
 0x14f   : > { %2830 = vmatpush3.bf16.msra.mxu1 %v3107_v10 }
 0x150   : > { %1548 = vmatmul.mubr.bf16.vlgmr.msra.gmra.mrb[12].mxu0 %v1415_v13  ;;  %2859 = vmatprep.subr.bf16.mxu1 %v3110_v11 }
 0x151   : > { %2882 = vmatpush3.bf16.msra.mxu0 %v3109_v12  ;;  %1895 = vmatprep.mubr.bf16.mxu0 %v1764_v15 }
 0x152   : > { %1372 = vmatmul.mubr.bf16.vlgmr.msra.gmra.mrb[8].mxu1 %v3661_v8  ;;  %2883 = vmatprep.subr.bf16.mxu0 %v3112_v14 }
 0x153   : > { %2860 = vmatpush3.bf16.msra.mxu1 %v3111_v16  ;;  %1721 = vmatprep.mubr.bf16.mxu1 %v1590_v18 }
 0x154   : > { %2861 = vmatprep.subr.bf16.mxu1 %v3114_v17 }
 0x155   : > { %2884 = vmatpush3.bf16.msra.mxu0 %v3113_v19 }
 0x156   : > { %2885 = vmatprep.subr.bf16.mxu0 %v3116_v20 }
 0x157   : > { %2862 = vmatpush3.bf16.msra.mxu1 %v3115_v21 }
 0x158   : > { %2863 = vmatprep.subr.bf16.mxu1 %v3118_v22 }
 0x159   : > { %2886 = vmatpush3.bf16.msra.mxu0 %v3117_v23 }
 0x15a   : > { %2887 = vmatprep.subr.bf16.mxu0 %v3120_v24 }
 0x15b   : > { %2864 = vmatpush3.bf16.msra.mxu1 %v3119_v25 }
 0x15c   : > { %2865 = vmatprep.subr.bf16.mxu1 %v3122_v26  ;;  %v1904_v26 = vlaneseq }
 0x15d   : > { %2888 = vmatpush3.bf16.msra.mxu0 %v3121_v27 }
 0x15e   : > { %2889 = vmatprep.subr.bf16.mxu0 %v3124_v28  ;;  %v3794_v27 = vshrl.u32 %v1904_v26, 7 }
 0x15f   : > { %2866 = vmatpush3.bf16.msra.mxu1 %v3123_v29  ;;  %v3143_v29 = vld [vmem:[%s3904_s6 + $0x18] sm:$0xff]  }
 0x160   : > { %2867 = vmatprep.subr.bf16.mxu1 %v3126_v30 }
 0x161   : > { %2890 = vmatpush3.bf16.msra.mxu0 %v3125_v31 }
 0x162   : > { %2891 = vmatprep.subr.bf16.mxu0 %v3128_v32 }
 0x163   : > { %2868 = vmatpush3.bf16.msra.mxu1 %v3127_v33 }
 0x164   : > { %2869 = vmatprep.subr.bf16.mxu1 %v3130_v34 }
 0x165   : > { %2892 = vmatpush3.bf16.msra.mxu0 %v3129_v35 }
 0x166   : > { %2893 = vmatprep.subr.bf16.mxu0 %v3132_v36  ;;  %v1915_v36 = vsub.s32 1, %v3794_v27 }
 0x167   : > { %2870 = vmatpush3.bf16.msra.mxu1 %v3131_v37  ;;  %v3804_v37 = vld [vmem:[%s3907_s9] sm:$0xff] }
 0x168   : > { %2871 = vmatprep.subr.bf16.mxu1 %v3134_v38 }
 0x169   : > { %2894 = vmatpush3.bf16.msra.mxu0 %v3133_v39 }
 0x16a   : > { %2895 = vmatprep.subr.bf16.mxu0 %v3136_v40 }
 0x16b   : > { %2872 = vmatpush3.bf16.msra.mxu1 %v3135_v41 }
 0x16c   : > { %2873 = vmatprep.subr.bf16.mxu1 %v3138_v42  ;;  %v1916_v42 = vrot.slane %v3804_v37, %v1915_v36 }
 0x16d   : > { %2896 = vmatpush3.bf16.msra.mxu0 %v3137_v43 }
 0x16e   : > { %2934 = vmatprep.subr.bf16.mxu0 %v3219_v47 }
 0x16f   : > { %2874 = vmatpush3.bf16.msra.mxu1 %v3139_v44 }
 0x170   : > { %1896 = vmatmul.mubr.bf16.vlgmr.msra.gmra.mrb[16].mxu0 %v1763_v46  ;;  %2916 = vmatprep.subr.bf16.mxu1 %v3219_v47 }
 0x171   : > { %2938 = vmatprep.mubr.msk.bf16.mxu0 %vm3220_vm3, %v3219_v47 }
 0x172   : > { %1722 = vmatmul.mubr.bf16.vlgmr.msra.gmra.mrb[12].mxu1 %v1589_v48 }
 0x173   : > { %2917 = vmatpush3.bf16.msra.mxu1 %v1922_v49  ;;  %2918 = vmatprep.mubr.msk.bf16.mxu1 %vm3220_vm3, %v3219_v47 }
 0x174   : > { %2922 = vmatprep.subr.bf16.mxu1 %v3219_v47 }
 0x17a   : > { %2919 = vmatmul.mubr.msk.bf16.vlgmr.msra.gmra.mrb[16].mxu1 %vm1917_vm4, %v1911_v51  ;;  %v1906_v51 = vsub.s32 0, %v3794_v27 }
 0x17b   : > { %2930 = vmatprep.mubr.msk.bf16.mxu1 %vm3220_vm3, %v3219_v47  ;;  %2923 = vmatpush3.bf16.msra.mxu1 %v3140_v52 }
 0x17c   : > { %2924 = vmatprep.subr.bf16.mxu1 %v3219_v47  ;;  %v1907_v52 = vrot.slane %v3804_v37, %v1906_v51 }
 0x17f   : > { %2925 = vmatpush3.bf16.msra.mxu1 %v3141_v53 }
 0x180   : > { %2926 = vmatprep.subr.bf16.mxu1 %v3219_v47 }
 0x183   : > { %2927 = vmatpush3.bf16.msra.mxu1 %v3142_v54 }
 0x184   : > { %2928 = vmatprep.subr.bf16.mxu1 %v3219_v47 }
 0x187   : > { %2929 = vmatpush3.bf16.msra.mxu1 %v3143_v29 }
 0x188   : > { %2942 = vmatprep.subr.bf16.mxu1 %v3219_v47 }
 0x1e3   : > { %v2765_v55 = vpop.f32.mrb[4].mxu0 }
 0x1e4   : > { %v2766_v57 = vpop.f32.mrb[5].mxu0 }
 0x1e5   : > { %v2767_v58 = vadd.f32 %v2766_v57, %v2765_v55  ;;  %v2743_v59 = vpop.f32.mrb[0].mxu1  ;;  %v2768_v60 = vpop.f32.mrb[6].mxu0 }
 0x1e6   : > { %v2744_v61 = vpop.f32.mrb[1].mxu1  ;;  %v2769_v62 = vpop.f32.mrb[7].mxu0  ;;  %v3145_v60 = vld [vmem:[%s3906_s8 + $0x8] sm:$0xff]  }
 0x1e7   : > { %v2745_v63 = vadd.f32 %v2744_v61, %v2743_v59  ;;  %v2746_v0 = vpop.f32.mrb[2].mxu1  ;;  %v2053_v61 = vld [vmem:[#allocation2] sm:$0x3] }
 0x1e8   : > { %v2747_v1 = vpop.f32.mrb[3].mxu1  ;;  %v2118_v62 = vpack.c.bf16 %v2053_v61, %v2053_v61  ;;  %v3147_v0 = vld [vmem:[%s3905_s7 + $0x8] sm:$0xff]  }
 0x1e9   : > { %v855_v2 = vadd.f32 %v2767_v58, %v2745_v63  ;;  %v3144_v58 = vld [vmem:[%s3906_s8] sm:$0xff]   ;;  %v2187_v1 = vsub.s32 4, %v3794_v27 }
 0x1ea   : > { %v3146_v63 = vld [vmem:[%s3905_s7] sm:$0xff]  }
 0x1eb   : > { %2935 = vmatpush3.bf16.msra.mxu0 %v3146_v63 }
 0x1ec   : > { %2936 = vmatprep.subr.bf16.mxu0 %v3219_v47 }
 0x1ef   : > { %2937 = vmatpush3.bf16.msra.mxu0 %v3147_v0 }
 0x203   : > { %v2809_v56 = vpop.f32.mrb[8].mxu0 }
 0x204   : > { %v2810_v3 = vpop.f32.mrb[9].mxu0 }
 0x205   : > { %v2811_v4 = vadd.f32 %v2810_v3, %v2809_v56  ;;  %v2787_v5 = vpop.f32.mrb[4].mxu1  ;;  %v2812_v6 = vpop.f32.mrb[10].mxu0  ;;  %v1982_v56 = vsub.s32 2, %v3794_v27 }
 0x206   : > { %v2788_v7 = vpop.f32.mrb[5].mxu1  ;;  %v2813_v8 = vpop.f32.mrb[11].mxu0 }
 0x207   : > { %v2789_v9 = vadd.f32 %v2788_v7, %v2787_v5  ;;  %v2790_v10 = vpop.f32.mrb[6].mxu1  ;;  %v1983_v3 = vrot.slane %v3804_v37, %v1982_v56 }
 0x208   : > { %v2791_v11 = vpop.f32.mrb[7].mxu1 }
 0x209   : > { %v1033_v12 = vadd.f32 %v2789_v9, %v855_v2  ;;  %v2188_v2 = vrot.slane %v3804_v37, %v2187_v1 }
 0x20b   : > { %v1207_v13 = vadd.f32 %v2811_v4, %v1033_v12 }
 0x223   : > { %v2853_v14 = vpop.f32.mrb[12].mxu0 }
 0x224   : > { %v2854_v15 = vpop.f32.mrb[13].mxu0 }
 0x225   : > { %v2855_v16 = vadd.f32 %v2854_v15, %v2853_v14  ;;  %v2831_v17 = vpop.f32.mrb[8].mxu1  ;;  %v2856_v18 = vpop.f32.mrb[14].mxu0 }
 0x226   : > { %v2832_v19 = vpop.f32.mrb[9].mxu1  ;;  %v2857_v20 = vpop.f32.mrb[15].mxu0 }
 0x227   : > { %v2833_v21 = vadd.f32 %v2832_v19, %v2831_v17  ;;  %v2834_v22 = vpop.f32.mrb[10].mxu1 }
 0x228   : > { %v2835_v23 = vpop.f32.mrb[11].mxu1 }
 0x229   : > { %v1379_v24 = vadd.f32 %v2833_v21, %v1207_v13 }
 0x22b   : > { %v1555_v25 = vadd.f32 %v2855_v16, %v1379_v24  ;;  %v2061_v16 = vsub.s32 3, %v3794_v27 }
 0x22d   : > { %v2062_v17 = vrot.slane %v3804_v37, %v2061_v16 }
 0x243   : > { %v2897_v28 = vpop.f32.mrb[16].mxu0 }
 0x244   : > { %v2898_v30 = vpop.f32.mrb[17].mxu0 }
 0x245   : > { %v2899_v31 = vadd.f32 %v2898_v30, %v2897_v28  ;;  %v2875_v32 = vpop.f32.mrb[12].mxu1  ;;  %v2900_v33 = vpop.f32.mrb[18].mxu0 }
 0x246   : > { %v2876_v34 = vpop.f32.mrb[13].mxu1  ;;  %v2901_v35 = vpop.f32.mrb[19].mxu0  ;;  %v2225_v33 = vsub.s32 5, %v3794_v27 }
 0x247   : > { %v2877_v38 = vadd.f32 %v2876_v34, %v2875_v32  ;;  %v2878_v39 = vpop.f32.mrb[14].mxu1 }
 0x248   : > { %v2879_v40 = vpop.f32.mrb[15].mxu1  ;;  %v2226_v35 = vrot.slane %v3804_v37, %v2225_v33 }
 0x249   : > { %v1729_v41 = vadd.f32 %v2877_v38, %v1555_v25 }
 0x24b   : > { %v1903_v43 = vadd.f32 %v2899_v31, %v1729_v41 }
 0x24d   : > { %v1958_v44 = vpop.f32.mrb[16].mxu1  ;;  %v1908_v53 = vadd.f32 %v1907_v52, %v1903_v43 }
 0x24e   : > { %v1959_v45 = vadd.f32 %v1958_v44, %v1916_v42  ;;  %v2920_v46 = vpop.f32.mrb[17].mxu1 }
 0x24f   : > { %v1961_v48 = vpop.f32.mrb[18].mxu1  ;;  %v1909_v54 = vmax.f32 %v1908_v53, 0.0 }
 0x250   : > { %v1964_v49 = vmax.f32 %v1959_v45, 0.0  ;;  %v2921_v50 = vpop.f32.mrb[19].mxu1 }
 0x252   : > { %1966 = vrot.lane.b32.xlu1 %v1964_v49, %s3221_s25  ;;  %v2241_v49 = vsub.s32 6, %v3794_v27 }
 0x254   : > { %v2242_v50 = vrot.slane %v3804_v37, %v2241_v49 }
 0x256   : > { %2190 = vrot.lane.b32.xlu1 %v2188_v2, %s3222_s28 }
 0x2c4   : > { %v1967_v55 = vpop.permute.xlu1 %1966 }
 0x2c5   : > { %v1970_v57 = vsel %vm1969_vm5, %v1909_v54, %v1967_v55 }
 0x2c6   : > { %v1971_v59 = vpack.c.bf16 %v1970_v57, %v1970_v57 }
 0x2c8   : > { %2931 = vmatmul.mubr.msk.bf16.vlgmr.msra.gmra.mrb[20].mxu1 %vm2008_vm6, %v1971_v59  ;;  %v2191_v10 = vpop.permute.xlu1 %2190 }
 0x2c9   : > { %2943 = vmatpush3.bf16.msra.mxu1 %v3144_v58  ;;  %2946 = vmatprep.mubr.msk.bf16.mxu1 %vm3220_vm3, %v3219_v47 }
 0x2ca   : > { %2944 = vmatprep.subr.bf16.mxu1 %v3219_v47 }
 0x2cd   : > { %2945 = vmatpush3.bf16.msra.mxu1 %v3145_v60 }
 0x2d0   : > { %2947 = vmatmul.mubr.msk.bf16.vlgmr.msra.gmra.mrb[24].mxu1 %vm1969_vm5, %v2118_v62 }
 0x39b   : > { %v2046_v4 = vpop.f32.mrb[20].mxu1 }
 0x39c   : > { %v2047_v5 = vadd.f32 %v2046_v4, %v1983_v3  ;;  %v2932_v6 = vpop.f32.mrb[21].mxu1 }
 0x39d   : > { %v2049_v47 = vpop.f32.mrb[22].mxu1 }
 0x39e   : > { %v2052_v7 = vmax.f32 %v2047_v5, 0.0  ;;  %v2933_v8 = vpop.f32.mrb[23].mxu1 }
 0x3a0   : > { %v2054_v9 = vpack.c.bf16 %v2052_v7, %v2052_v7 }
 0x3a2   : > { %2939 = vmatmul.mubr.msk.bf16.vlgmr.msra.gmra.mrb[20].mxu0 %vm1969_vm5, %v2054_v9 }
 0x3a3   : > { %v2172_v11 = vpop.f32.mrb[24].mxu1 }
 0x3a4   : > { %v2948_v12 = vpop.f32.mrb[25].mxu1  ;;  %v2193_v13 = vadd.f32 %v2191_v10, %v2172_v11 }
 0x3a5   : > { %v2175_v14 = vpop.f32.mrb[26].mxu1 }
 0x3a6   : > { %v2949_v15 = vpop.f32.mrb[27].mxu1  ;;  %2195 = vrot.lane.b32.xlu0 %v2193_v13, %s3222_s28 }
 0x418   : > { %v2196_v28 = vpop.permute.xlu0 %2195 }
 0x475   : > { %v2112_v18 = vpop.f32.mrb[20].mxu0 }
 0x476   : > { %v2113_v19 = vadd.f32 %v2112_v18, %v2062_v17  ;;  %v2940_v20 = vpop.f32.mrb[21].mxu0 }
 0x477   : > { %v2115_v21 = vpop.f32.mrb[22].mxu0 }
 0x478   : > { %v2178_v22 = vadd.f32 %v2172_v11, %v2113_v19  ;;  %v2941_v23 = vpop.f32.mrb[23].mxu0 }
 0x47a   : > { %v2722_v24 = vmul.f32 -1.442695, %v2178_v22 }
 0x47c   : > { %3148 = vpow2.f32 %v2722_v24 }
 0x486   : > { %v3149_v25 = vpop.eup %3148 }
 0x487   : > { %v2182_v26 = vadd.f32 1.0, %v3149_v25 }
 0x489   : > { %3150 = vrcp.f32 %v2182_v26 }
 0x493   : > { %v3151_v29 = vpop.eup %3150 }
 0x494   : > { %v2198_v30 = vmul.f32 %v3151_v29, %v2196_v28  ;;  %v2205_v38 = vsub.f32 1.0, %v3151_v29 }
 0x496   : > { %2200 = vrot.lane.b32.xlu1 %v2198_v30, %s3222_s28  ;;  %s3160_s28 = scalar_lea.vmem %s3159_s21, 64 }
 0x497   : > { %p3162_p2 = scmp.lt.s32.totalorder %s3160_s28, %s3154_s20 }
 0x499   : > { %p3163_p3 = por %p3162_p2, %p3161_p1 }
 0x49a   : > { %2212 = vrot.lane.b32.xlu1 %v2053_v61, %s3221_s25 }
 0x49b   : > { %p3164_p4 = pnand %p3163_p3, %p3157_p0 }
 0x508   : > { %v2201_v31 = vpop.permute.xlu1 %2200 }
 0x509   : > { %v2203_v32 = vadd.f32 %v2201_v31, %v2113_v19 }
 0x50b   : > { %3152 = vtanh.f32 %v2203_v32 }
 0x50c   : > { %v2213_v36 = vpop.permute.xlu1 %2212 }
 0x50d   : > { %v2215_v40 = vmul.f32 %v3151_v29, %v2213_v36 }
 0x515   : > { %v3153_v34 = vpop.eup %3152 }
 0x516   : > { %2207 = vrot.lane.b32.xlu0 %v3153_v34, %s3223_s15 }
 0x51a   : > { %2228 = vrot.lane.b32.xlu0 %v2226_v35, %s3221_s25 }
 0x588   : > { %v2208_v39 = vpop.permute.xlu0 %2207 }
 0x589   : > { %v2210_v41 = vmul.f32 %v2208_v39, %v2205_v38 }
 0x58b   : > { %v2216_v42 = vadd.f32 %v2215_v40, %v2210_v41 }
 0x58c   : > { %v2229_v43 = vpop.permute.xlu0 %2228 }
 0x58d   : > { %v2231_v44 = vmul.f32 %v2229_v43, %v2216_v42 }
 0x58f   : > { %2233 = vrot.lane.b32.xlu1 %v2231_v44, %s3223_s15 }
 0x593   : > { %2218 = vrot.lane.b32.xlu1 %v2216_v42, %s3223_s15 }
 0x601   : > { %v2234_v45 = vpop.permute.xlu1 %2233 }
 0x602   : > { %v2236_v46 = vsel %vm2221_vm7, %v2234_v45, 0.0 }
 0x603   : > { %2237 = vadd.xlane.f32.xlu0 %v2236_v46 }
 0x605   : > { %v2219_v48 = vpop.permute.xlu1 %2218 }
 0x606   : > { %2222 = vst.msk [vmem:[#allocation2] sm:$0x3] %vm2221_vm7, %v2219_v48 }
 0x690   : > { %v2238_v51 = vpop.xlane.xlu0 %2237 }
 0x691   : > { %v2243_v52 = vadd.f32 %v2242_v50, %v2238_v51 }
 0x693   : > { %2245 = vrot.lane.b32.xlu1 %v2243_v52, %s3221_s25  ;;  %s2253_s25 = scalar_lea.sflag [#allocation4], %s3915_s17 }
 0x705   : > { %v2246_v53 = vpop.permute.xlu1 %2245 }
 0x706   : > { %v2248_v54 = vsel %vm1969_vm5, %v2219_v48, %v2246_v53 }
 0x707   : > { %v2250_v27 = vsel %vm2249_vm8, %v2248_v54, 0.0 }
 0x708   : > { %2251 = vst [vmem:[%s365_s22] sm:$0x3] %v2250_v27 }
 0x709   : > { %3167 = shalt.err (!%p3164_p4)
}
 0x70a   : > { %s3168_s22 = scalar_lea.hbm %s3852_s12, 32  ;;  %s3172_s29 = scalar_lea.hbm %s3908_s10, 256 }
 0x70b   : > { %p3169_p7 = scmp.ne.s32.totalorder %s3852_s12, %s3168_s22  ;;  %p3173_p10 = scmp.lt.u32.totalorder %s3852_s12, %s3908_s10 }
 0x70c   : > { %p3174_p11 = scmp.lt.u32.totalorder %s3172_s29, %s3168_s22  ;;  %p3176_p13 = scmp.lt.u32.totalorder %s3168_s22, %s3852_s12 }
 0x70d   : > { %p3170_p8 = pnand %p3169_p7, %p3318_p5 }
 0x70e   : > { %p3175_p12 = por %p3174_p11, %p3173_p10 }
 0x70f   : > { %p3171_p9 = pneg %p3170_p8 }
 0x710   : > { %p3177_p0 = por %p3176_p13, %p3175_p12 }
 0x712   : > { %p3178_p1 = pnand %p3177_p0, %p3171_p9 }
 0x714   : > { %3181 = shalt.err (!%p3178_p1)
}
 0x715   : > { %2951 = dma.vmem_to_hbm [thread:$0]  (%p3318_p5), %s3854_s30, 32, %s3852_s12, %s2253_s25  }
 0x716 PF: > { %p2957_p2 = scmp.ge.s32.totalorder %s3216_s16, 2  ;;  %s2278_s17 = sand.u32 1, %s3204_s13  }
 0x717   : > { %s2279_s20 = scalar_lea.sflag [#allocation4], %s2278_s17 }
 0x718   : > { %p2954_p3 = pnand %p2957_p2, %p3322_p6 }
 0x71a   : > { %3199 = dma.done.wait (!%p2954_p3), %s2279_s20, 32  }
 0x71b   : > { %3201 = vsyncadd (!%p2954_p3), %s2279_s20, 4294967264  ;;  %s3916_s27 = sld [smem:[#allocation6_spill]]  ;;  %s3917_s15 = sld [smem:[#allocation7_spill]] }
 0x71c   : > { %p20_p4 = scmp.ge.s32.totalorder %s3305_s19, 10   ;;  %s3918_s13 = smov %s3208_s14 }
 0x71d   : > { %s3920_s16 = smov %s3305_s19 }
 0x71e   :  { %22 = sbr.rel (!%p20_p4) target bundleno = 3 (0x3), region = 109 }
 0x721   : > { %s3919_s14 = smov %s3916_s27 }
 0x725   :  { %2284 = vsyncpa [#allocation4], 1 }
 0x726   :  { %2286 = vsyncpa [#allocation4 + $0x1], 1 }

</bundles_post_ra>
